<compile_context>
chip_gen: v7x
topology: tpu7x:2x2x1
jax: 0.10.0
libtpu: 0.0.40
codegen_flags: <defaults>
</compile_context>

<pallas_src>
import functools

import jax
import jax.numpy as jnp
from jax.experimental import pallas as pl
from jax.experimental.pallas import tpu as pltpu


HIDDEN_DIM = 2
IMG = 28 * 28        # 784
IMG_PAD = 896        # 7 * 128, lane-dense output width


def _vae_kernel(x_ref, noise_ref,
                w1e_ref, b1e_ref, wml_ref, bml_ref,
                w1d_ref, b1d_ref, w2d_ref, b2d_ref,
                out_ref, kl_ref,
                *, n_valid, hidden_dim):
    tile_n = x_ref.shape[0]

    # ---------------- encoder ----------------
    # Big matmul #1: bf16 x bf16 on the MXU, f32 accumulation.
    h = jnp.dot(x_ref[...], w1e_ref[...],
                preferred_element_type=jnp.float32) + b1e_ref[...]
    h = jnp.maximum(h, 0.0)                                       # [tile_n, 512] f32

    # Fused mu / log-sigma projection (single [512, 2H] matmul, then slice).
    ml = jnp.dot(h, wml_ref[...],
                 preferred_element_type=jnp.float32) + bml_ref[...]    # [tile_n, 2H]
    mu = ml[:, :hidden_dim]
    log_sigma = ml[:, hidden_dim:]
    sigma = jnp.exp(log_sigma)

    # reparameterization: hidden = mu + eps * sigma
    hidden = mu + noise_ref[...] * sigma                          # [tile_n, H]

    # KL = sum(sigma^2 + mu^2 - log(sigma) - 1/2) over the *valid* rows of this tile.
    kl_elem = sigma * sigma + mu * mu - log_sigma - 0.5
    row = (jax.lax.broadcasted_iota(jnp.int32, (tile_n, 1), 0)
           + pl.program_id(0) * tile_n)
    valid = (row < n_valid).astype(jnp.float32)                   # mask batch padding
    kl_ref[0, 0] = jnp.sum(jnp.sum(kl_elem, axis=-1, keepdims=True) * valid)

    # ---------------- decoder ----------------
    # First layer has K == hidden_dim (2): degenerate MXU shape -> do it on the VPU.
    d = b1d_ref[...]                                              # [1, 512]
    for j in range(hidden_dim):
        d = d + hidden[:, j:j + 1] * w1d_ref[j:j + 1, :]          # broadcast mul-add
    d = jnp.maximum(d, 0.0)                                       # [tile_n, 512]

    # Big matmul #2: bf16 x bf16, f32 accumulation, lane-padded output (896 lanes).
    logits = jnp.dot(d.astype(jnp.bfloat16), w2d_ref[...],
                     preferred_element_type=jnp.float32) + b2d_ref[...]
    out_ref[...] = jax.nn.sigmoid(logits)


def init_params(key, hidden_dim=HIDDEN_DIM):
    """Deterministic init mimicking nn.Linear default (uniform +-1/sqrt(fan_in)).
    Weights are returned transposed: [in_features, out_features], all f32."""
    def linear(k, fan_in, fan_out):
        k_w, k_b = jax.random.split(k)
        bound = 1.0 / jnp.sqrt(float(fan_in))
        w = jax.random.uniform(k_w, (fan_in, fan_out), jnp.float32, -bound, bound)
        b = jax.random.uniform(k_b, (1, fan_out), jnp.float32, -bound, bound)
        return w, b

    keys = jax.random.split(key, 5)
    w1e, b1e = linear(keys[0], IMG, 512)          # encoder.linear1
    w2e, b2e = linear(keys[1], 512, hidden_dim)   # encoder.linear2 (mu)
    w3e, b3e = linear(keys[2], 512, hidden_dim)   # encoder.linear3 (log sigma)
    w1d, b1d = linear(keys[3], hidden_dim, 512)   # decoder.linear1
    w2d, b2d = linear(keys[4], 512, IMG)          # decoder.linear2
    return dict(w1e=w1e, b1e=b1e, w2e=w2e, b2e=b2e, w3e=w3e, b3e=b3e,
                w1d=w1d, b1d=b1d, w2d=w2d, b2d=b2d)


def pack_params(p):
    """Kernel-ready params: bf16 big weights, fused mu/log-sigma projection,
    lane-padded (784 -> 896) decoder output weights/bias."""
    w1e = p["w1e"].astype(jnp.bfloat16)                           # [784, 512] bf16
    b1e = p["b1e"]                                                # [1, 512] f32
    wml = jnp.concatenate([p["w2e"], p["w3e"]], axis=1)           # [512, 2H] f32
    bml = jnp.concatenate([p["b2e"], p["b3e"]], axis=1)           # [1, 2H] f32
    w1d = p["w1d"]                                                # [H, 512] f32
    b1d = p["b1d"]                                                # [1, 512] f32
    w2d = jnp.pad(p["w2d"], ((0, 0), (0, IMG_PAD - IMG))).astype(jnp.bfloat16)  # [512, 896]
    b2d = jnp.pad(p["b2d"], ((0, 0), (0, IMG_PAD - IMG)))         # [1, 896] f32
    return (w1e, b1e, wml, bml, w1d, b1d, w2d, b2d)


def vae_forward(x, noise, params, *, block_n=256):
    """x: [N, 1, 28, 28] f32 (NCHW), noise: [N, hidden_dim] f32.
    Returns (reconstruction [N, 1, 28, 28] f32, kl scalar f32)."""
    N = x.shape[0]
    hidden_dim = noise.shape[1]
    x_flat = x.reshape(N, IMG)

    # Batch tiling: tile of up to `block_n` rows (MXU-friendly), pad N up to a multiple.
    tile_n = min(block_n, ((N + 7) // 8) * 8)
    n_pad = ((N + tile_n - 1) // tile_n) * tile_n
    num_tiles = n_pad // tile_n

    x_bf = jnp.pad(x_flat.astype(jnp.bfloat16), ((0, n_pad - N), (0, 0)))
    noise_p = jnp.pad(noise, ((0, n_pad - N), (0, 0)))

    w1e, b1e, wml, bml, w1d, b1d, w2d, b2d = params

    batch_map = lambda i: (i, 0)
    const_map = lambda i: (0, 0)        # weights: same block every step -> resident

    in_specs = [
        pl.BlockSpec((tile_n, IMG), batch_map),            # x (bf16)
        pl.BlockSpec((tile_n, hidden_dim), batch_map),     # noise (f32)
        pl.BlockSpec(w1e.shape, const_map),
        pl.BlockSpec(b1e.shape, const_map),
        pl.BlockSpec(wml.shape, const_map),
        pl.BlockSpec(bml.shape, const_map),
        pl.BlockSpec(w1d.shape, const_map),
        pl.BlockSpec(b1d.shape, const_map),
        pl.BlockSpec(w2d.shape, const_map),
        pl.BlockSpec(b2d.shape, const_map),
    ]
    out_specs = (
        pl.BlockSpec((tile_n, IMG_PAD), batch_map),                                  # recon
        pl.BlockSpec((1, 1), batch_map, memory_space=pltpu.MemorySpace.SMEM),        # KL partial
    )

    weight_bytes = sum(int(w.size) * w.dtype.itemsize for w in params)
    cost = pl.CostEstimate(
        flops=2 * n_pad * (IMG * 512 + 512 * 2 * hidden_dim
                           + hidden_dim * 512 + 512 * IMG_PAD),
        transcendentals=n_pad * (hidden_dim + IMG_PAD),     # exp + sigmoid
        bytes_accessed=(x_bf.size * 2 + noise_p.size * 4 + weight_bytes
                        + n_pad * IMG_PAD * 4 + num_tiles * 4),
    )

    kernel = functools.partial(_vae_kernel, n_valid=N, hidden_dim=hidden_dim)

    out, kl_parts = pl.pallas_call(
        kernel,
        grid=(num_tiles,),
        out_shape=(jax.ShapeDtypeStruct((n_pad, IMG_PAD), jnp.float32),
                   jax.ShapeDtypeStruct((num_tiles, 1), jnp.float32)),
        in_specs=in_specs,
        out_specs=out_specs,
        compiler_params=pltpu.CompilerParams(
            dimension_semantics=("parallel",)),   # shards batch tiles across v7x's 2 TCs
        cost_estimate=cost,
    )(x_bf, noise_p, *params)

    recon = out[:N, :IMG].reshape(N, 1, 28, 28)
    kl = jnp.sum(kl_parts)
    return recon, kl


if __name__ == "__main__":
    key = jax.random.PRNGKey(0)
    k_x, k_noise = jax.random.split(key)

    N = 8
    x = jax.random.uniform(k_x, (N, 1, 28, 28), jnp.float32)          # fake MNIST batch
    noise = jax.random.normal(k_noise, (N, HIDDEN_DIM), jnp.float32)  # eps ~ N(0,1)

    raw = init_params(jax.random.PRNGKey(42))
    params = pack_params(raw)

    recon, kl = vae_forward(x, noise, params)
    jax.block_until_ready(recon)
    jax.block_until_ready(kl)

    # pure-JAX reference with the same bf16 weight quantization as the kernel
    xf = x.reshape(N, IMG)
    h = jnp.maximum(
        jnp.dot(xf.astype(jnp.bfloat16), raw["w1e"].astype(jnp.bfloat16),
                preferred_element_type=jnp.float32) + raw["b1e"], 0.0)
    mu = h @ raw["w2e"] + raw["b2e"]
    log_sigma = h @ raw["w3e"] + raw["b3e"]
    sigma = jnp.exp(log_sigma)
    hid = mu + noise * sigma
    kl_ref = jnp.sum(sigma ** 2 + mu ** 2 - log_sigma - 0.5)
    d = jnp.maximum(hid @ raw["w1d"] + raw["b1d"], 0.0)
    logits = jnp.dot(d.astype(jnp.bfloat16), raw["w2d"].astype(jnp.bfloat16),
                     preferred_element_type=jnp.float32) + raw["b2d"]
    ref = jax.nn.sigmoid(logits).reshape(N, 1, 28, 28)

    assert recon.shape == (N, 1, 28, 28)
    assert jnp.allclose(recon, ref, atol=5e-3, rtol=1e-2), \
        float(jnp.max(jnp.abs(recon - ref)))
    assert jnp.allclose(kl, kl_ref, atol=5e-2, rtol=1e-3), (float(kl), float(kl_ref))

    print("KERNEL_OK")
</pallas_src>

<mosaic_0001>
module attributes {stable_mosaic.version = 11 : i64} {
  func.func @_vae_kernel(%arg0: i32, %arg1: memref<8x784xbf16, #tpu.memory_space<vmem>>, %arg2: memref<8x2xf32, #tpu.memory_space<vmem>>, %arg3: memref<784x512xbf16, #tpu.memory_space<vmem>>, %arg4: memref<1x512xf32, #tpu.memory_space<vmem>>, %arg5: memref<512x4xf32, #tpu.memory_space<vmem>>, %arg6: memref<1x4xf32, #tpu.memory_space<vmem>>, %arg7: memref<2x512xf32, #tpu.memory_space<vmem>>, %arg8: memref<1x512xf32, #tpu.memory_space<vmem>>, %arg9: memref<512x896xbf16, #tpu.memory_space<vmem>>, %arg10: memref<1x896xf32, #tpu.memory_space<vmem>>, %arg11: memref<8x896xf32, #tpu.memory_space<vmem>>, %arg12: memref<1x1xf32, #tpu.memory_space<smem>>) attributes {dimension_semantics = [#tpu.dimension_semantics<parallel>], iteration_bounds = array<i64: 1>, scalar_prefetch = 0 : i64, scratch_operands = 0 : i64, tpu.core_type = #tpu.core_type<tc>, window_params = [{transform_indices = @transform_0, window_bounds = array<i64: 8, 784>}, {transform_indices = @transform_1, window_bounds = array<i64: 8, 2>}, {pipeline_mode = #tpu.pipeline_mode<synchronous>, transform_indices = @transform_2, window_bounds = array<i64: 784, 512>}, {pipeline_mode = #tpu.pipeline_mode<synchronous>, transform_indices = @transform_3, window_bounds = array<i64: 1, 512>}, {pipeline_mode = #tpu.pipeline_mode<synchronous>, transform_indices = @transform_4, window_bounds = array<i64: 512, 4>}, {pipeline_mode = #tpu.pipeline_mode<synchronous>, transform_indices = @transform_5, window_bounds = array<i64: 1, 4>}, {pipeline_mode = #tpu.pipeline_mode<synchronous>, transform_indices = @transform_6, window_bounds = array<i64: 2, 512>}, {pipeline_mode = #tpu.pipeline_mode<synchronous>, transform_indices = @transform_7, window_bounds = array<i64: 1, 512>}, {pipeline_mode = #tpu.pipeline_mode<synchronous>, transform_indices = @transform_8, window_bounds = array<i64: 512, 896>}, {pipeline_mode = #tpu.pipeline_mode<synchronous>, transform_indices = @transform_9, window_bounds = array<i64: 1, 896>}, {transform_indices = @transform_10, window_bounds = array<i64: 8, 896>}, {transform_indices = @transform_11, window_bounds = array<i64: 1, 1>}]} {
    %c0 = arith.constant 0 : index
    %c0_0 = arith.constant 0 : index
    %0 = vector.load %arg1[%c0, %c0_0] : memref<8x784xbf16, #tpu.memory_space<vmem>>, vector<8x784xbf16>
    %c0_1 = arith.constant 0 : index
    %c0_2 = arith.constant 0 : index
    %1 = vector.load %arg3[%c0_1, %c0_2] : memref<784x512xbf16, #tpu.memory_space<vmem>>, vector<784x512xbf16>
    %cst = arith.constant dense<0.000000e+00> : vector<8x512xf32>
    %2 = tpu.matmul %0, %1, %cst {dimension_numbers = #tpu.dot_dimension_numbers<[1], [0], [0], [1], [0, 0, 1, 1], [], []>} : vector<8x784xbf16>, vector<784x512xbf16>, vector<8x512xf32> -> vector<8x512xf32>
    %c0_3 = arith.constant 0 : index
    %c0_4 = arith.constant 0 : index
    %3 = vector.load %arg4[%c0_3, %c0_4] : memref<1x512xf32, #tpu.memory_space<vmem>>, vector<1x512xf32>
    %4 = vector.broadcast %3 : vector<1x512xf32> to vector<8x512xf32>
    %5 = arith.addf %2, %4 : vector<8x512xf32>
    %cst_5 = arith.constant 0.000000e+00 : f32
    %6 = vector.broadcast %cst_5 : f32 to vector<8x512xf32>
    %7 = arith.maximumf %5, %6 : vector<8x512xf32>
    %c0_6 = arith.constant 0 : index
    %c0_7 = arith.constant 0 : index
    %8 = vector.load %arg5[%c0_6, %c0_7] : memref<512x4xf32, #tpu.memory_space<vmem>>, vector<512x4xf32>
    %cst_8 = arith.constant dense<0.000000e+00> : vector<8x4xf32>
    %9 = tpu.matmul %7, %8, %cst_8 {dimension_numbers = #tpu.dot_dimension_numbers<[1], [0], [0], [1], [0, 0, 1, 1], [], []>} : vector<8x512xf32>, vector<512x4xf32>, vector<8x4xf32> -> vector<8x4xf32>
    %c0_9 = arith.constant 0 : index
    %c0_10 = arith.constant 0 : index
    %10 = vector.load %arg6[%c0_9, %c0_10] : memref<1x4xf32, #tpu.memory_space<vmem>>, vector<1x4xf32>
    %11 = vector.broadcast %10 : vector<1x4xf32> to vector<8x4xf32>
    %12 = arith.addf %9, %11 : vector<8x4xf32>
    %13 = vector.extract_strided_slice %12 {offsets = [0, 0], sizes = [8, 2], strides = [1, 1]} : vector<8x4xf32> to vector<8x2xf32>
    %14 = vector.extract_strided_slice %12 {offsets = [0, 2], sizes = [8, 2], strides = [1, 1]} : vector<8x4xf32> to vector<8x2xf32>
    %15 = math.exp %14 : vector<8x2xf32>
    %c0_11 = arith.constant 0 : index
    %c0_12 = arith.constant 0 : index
    %16 = vector.load %arg2[%c0_11, %c0_12] : memref<8x2xf32, #tpu.memory_space<vmem>>, vector<8x2xf32>
    %17 = arith.mulf %16, %15 : vector<8x2xf32>
    %18 = arith.addf %13, %17 : vector<8x2xf32>
    %19 = arith.mulf %15, %15 : vector<8x2xf32>
    %20 = arith.mulf %13, %13 : vector<8x2xf32>
    %21 = arith.addf %19, %20 : vector<8x2xf32>
    %22 = arith.subf %21, %14 : vector<8x2xf32>
    %cst_13 = arith.constant 5.000000e-01 : f32
    %23 = vector.broadcast %cst_13 : f32 to vector<8x2xf32>
    %24 = arith.subf %22, %23 : vector<8x2xf32>
    %25 = tpu.iota {dimensions = array<i32: 0>} : vector<8x1xi32>
    %c8_i32 = arith.constant 8 : i32
    %26 = arith.muli %arg0, %c8_i32 : i32
    %27 = vector.broadcast %26 : i32 to vector<8x1xi32>
    %28 = arith.addi %25, %27 : vector<8x1xi32>
    %c8_i32_14 = arith.constant 8 : i32
    %29 = vector.broadcast %c8_i32_14 : i32 to vector<8x1xi32>
    %30 = arith.cmpi slt, %28, %29 : vector<8x1xi32>
    %31 = arith.extui %30 : vector<8x1xi1> to vector<8x1xi32>
    %32 = arith.sitofp %31 : vector<8x1xi32> to vector<8x1xf32>
    %cst_15 = arith.constant dense<0.000000e+00> : vector<8xf32>
    %33 = vector.multi_reduction <add>, %24, %cst_15 [1] : vector<8x2xf32> to vector<8xf32>
    %34 = vector.shape_cast %33 : vector<8xf32> to vector<8x1xf32>
    %35 = arith.mulf %34, %32 : vector<8x1xf32>
    %36 = vector.shape_cast %35 : vector<8x1xf32> to vector<1x8x1xf32>
    %cst_16 = arith.constant dense<0.000000e+00> : vector<1xf32>
    %37 = vector.multi_reduction <add>, %36, %cst_16 [1, 2] : vector<1x8x1xf32> to vector<1xf32>
    %38 = vector.shape_cast %37 : vector<1xf32> to vector<1x1x1xf32>
    %39 = vector.extract %38[0, 0, 0] : f32 from vector<1x1x1xf32>
    %c0_17 = arith.constant 0 : index
    %c0_18 = arith.constant 0 : index
    %40 = memref.load %arg12[%c0_17, %c0_18] : memref<1x1xf32, #tpu.memory_space<smem>>
    memref.store %39, %arg12[%c0_17, %c0_18] : memref<1x1xf32, #tpu.memory_space<smem>>
    %c0_19 = arith.constant 0 : index
    %c0_20 = arith.constant 0 : index
    %41 = vector.load %arg8[%c0_19, %c0_20] : memref<1x512xf32, #tpu.memory_space<vmem>>, vector<1x512xf32>
    %42 = vector.extract_strided_slice %18 {offsets = [0, 0], sizes = [8, 1], strides = [1, 1]} : vector<8x2xf32> to vector<8x1xf32>
    %c0_21 = arith.constant 0 : index
    %c0_22 = arith.constant 0 : index
    %43 = vector.load %arg7[%c0_21, %c0_22] : memref<2x512xf32, #tpu.memory_space<vmem>>, vector<1x512xf32>
    %44 = vector.broadcast %42 : vector<8x1xf32> to vector<8x512xf32>
    %45 = vector.broadcast %43 : vector<1x512xf32> to vector<8x512xf32>
    %46 = arith.mulf %44, %45 : vector<8x512xf32>
    %47 = vector.broadcast %41 : vector<1x512xf32> to vector<8x512xf32>
    %48 = arith.addf %47, %46 : vector<8x512xf32>
    %49 = vector.extract_strided_slice %18 {offsets = [0, 1], sizes = [8, 1], strides = [1, 1]} : vector<8x2xf32> to vector<8x1xf32>
    %c1 = arith.constant 1 : index
    %c0_23 = arith.constant 0 : index
    %50 = vector.load %arg7[%c1, %c0_23] : memref<2x512xf32, #tpu.memory_space<vmem>>, vector<1x512xf32>
    %51 = vector.broadcast %49 : vector<8x1xf32> to vector<8x512xf32>
    %52 = vector.broadcast %50 : vector<1x512xf32> to vector<8x512xf32>
    %53 = arith.mulf %51, %52 : vector<8x512xf32>
    %54 = arith.addf %48, %53 : vector<8x512xf32>
    %cst_24 = arith.constant 0.000000e+00 : f32
    %55 = vector.broadcast %cst_24 : f32 to vector<8x512xf32>
    %56 = arith.maximumf %54, %55 : vector<8x512xf32>
    %57 = arith.truncf %56 : vector<8x512xf32> to vector<8x512xbf16>
    %c0_25 = arith.constant 0 : index
    %c0_26 = arith.constant 0 : index
    %58 = vector.load %arg9[%c0_25, %c0_26] : memref<512x896xbf16, #tpu.memory_space<vmem>>, vector<512x896xbf16>
    %cst_27 = arith.constant dense<0.000000e+00> : vector<8x896xf32>
    %59 = tpu.matmul %57, %58, %cst_27 {dimension_numbers = #tpu.dot_dimension_numbers<[1], [0], [0], [1], [0, 0, 1, 1], [], []>} : vector<8x512xbf16>, vector<512x896xbf16>, vector<8x896xf32> -> vector<8x896xf32>
    %c0_28 = arith.constant 0 : index
    %c0_29 = arith.constant 0 : index
    %60 = vector.load %arg10[%c0_28, %c0_29] : memref<1x896xf32, #tpu.memory_space<vmem>>, vector<1x896xf32>
    %61 = vector.broadcast %60 : vector<1x896xf32> to vector<8x896xf32>
    %62 = arith.addf %59, %61 : vector<8x896xf32>
    %63 = arith.negf %62 : vector<8x896xf32>
    %64 = math.exp %63 : vector<8x896xf32>
    %cst_30 = arith.constant 1.000000e+00 : f32
    %65 = vector.broadcast %cst_30 : f32 to vector<8x896xf32>
    %66 = arith.addf %65, %64 : vector<8x896xf32>
    %67 = arith.divf %65, %66 : vector<8x896xf32>
    %c0_31 = arith.constant 0 : index
    %c0_32 = arith.constant 0 : index
    %68 = vector.load %arg11[%c0_31, %c0_32] : memref<8x896xf32, #tpu.memory_space<vmem>>, vector<8x896xf32>
    tpu.vector_store %arg11[%c0_31, %c0_32], %67 {strides = array<i32>} : memref<8x896xf32, #tpu.memory_space<vmem>>, vector<8x896xf32>,
    return
  }
  func.func @transform_0(%arg0: i32) -> (i32, i32) {
    %c0_i32 = arith.constant 0 : i32
    %c0_i32_0 = arith.constant 0 : i32
    return %arg0, %c0_i32 : i32, i32
  }
  func.func @transform_1(%arg0: i32) -> (i32, i32) {
    %c0_i32 = arith.constant 0 : i32
    %c0_i32_0 = arith.constant 0 : i32
    return %arg0, %c0_i32 : i32, i32
  }
  func.func @transform_2(%arg0: i32) -> (i32, i32) {
    %c0_i32 = arith.constant 0 : i32
    %c0_i32_0 = arith.constant 0 : i32
    %c0_i32_1 = arith.constant 0 : i32
    return %c0_i32, %c0_i32_0 : i32, i32
  }
  func.func @transform_3(%arg0: i32) -> (i32, i32) {
    %c0_i32 = arith.constant 0 : i32
    %c0_i32_0 = arith.constant 0 : i32
    %c0_i32_1 = arith.constant 0 : i32
    return %c0_i32, %c0_i32_0 : i32, i32
  }
  func.func @transform_4(%arg0: i32) -> (i32, i32) {
    %c0_i32 = arith.constant 0 : i32
    %c0_i32_0 = arith.constant 0 : i32
    %c0_i32_1 = arith.constant 0 : i32
    return %c0_i32, %c0_i32_0 : i32, i32
  }
  func.func @transform_5(%arg0: i32) -> (i32, i32) {
    %c0_i32 = arith.constant 0 : i32
    %c0_i32_0 = arith.constant 0 : i32
    %c0_i32_1 = arith.constant 0 : i32
    return %c0_i32, %c0_i32_0 : i32, i32
  }
  func.func @transform_6(%arg0: i32) -> (i32, i32) {
    %c0_i32 = arith.constant 0 : i32
    %c0_i32_0 = arith.constant 0 : i32
    %c0_i32_1 = arith.constant 0 : i32
    return %c0_i32, %c0_i32_0 : i32, i32
  }
  func.func @transform_7(%arg0: i32) -> (i32, i32) {
    %c0_i32 = arith.constant 0 : i32
    %c0_i32_0 = arith.constant 0 : i32
    %c0_i32_1 = arith.constant 0 : i32
    return %c0_i32, %c0_i32_0 : i32, i32
  }
  func.func @transform_8(%arg0: i32) -> (i32, i32) {
    %c0_i32 = arith.constant 0 : i32
    %c0_i32_0 = arith.constant 0 : i32
    %c0_i32_1 = arith.constant 0 : i32
    return %c0_i32, %c0_i32_0 : i32, i32
  }
  func.func @transform_9(%arg0: i32) -> (i32, i32) {
    %c0_i32 = arith.constant 0 : i32
    %c0_i32_0 = arith.constant 0 : i32
    %c0_i32_1 = arith.constant 0 : i32
    return %c0_i32, %c0_i32_0 : i32, i32
  }
  func.func @transform_10(%arg0: i32) -> (i32, i32) {
    %c0_i32 = arith.constant 0 : i32
    %c0_i32_0 = arith.constant 0 : i32
    return %arg0, %c0_i32 : i32, i32
  }
  func.func @transform_11(%arg0: i32) -> (i32, i32) {
    %c0_i32 = arith.constant 0 : i32
    %c0_i32_0 = arith.constant 0 : i32
    return %arg0, %c0_i32 : i32, i32
  }
}

</mosaic_0001>

<bundles_post_ra>
// kernel: tpu_custom_call.1
= control target key start
LH: loop header
LB: loop body
LE: loop exit
PB: predicated region body
PF: predicated region fallthrough
CT: control target
= control target key end

     0   :  { %17 = vsyncpa [#allocation3], 0  ;;  %s5711_s0 = inlined_call_operand.vmem [shape: bf16[8,784], index: 0, kind: input, shape index: {}]   ;;  %s5712_s1 = inlined_call_operand.vmem [shape: f32[8,2], index: 1, kind: input, shape index: {}]   ;;  %s5713_s2 = inlined_call_operand.hbm [shape: bf16[784,512], index: 2, kind: input, shape index: {}]   ;;  %s5714_s3 = inlined_call_operand.vmem [shape: f32[1,512], index: 3, kind: input, shape index: {}]   ;;  %s5715_s4 = inlined_call_operand.vmem [shape: f32[512,4], index: 4, kind: input, shape index: {}]   ;;  %s5716_s5 = inlined_call_operand.vmem [shape: f32[1,4], index: 5, kind: input, shape index: {}]   ;;  %s5717_s6 = inlined_call_operand.vmem [shape: f32[2,512], index: 6, kind: input, shape index: {}]   ;;  %s5718_s7 = inlined_call_operand.vmem [shape: f32[1,512], index: 7, kind: input, shape index: {}]   ;;  %s5719_s8 = inlined_call_operand.hbm [shape: bf16[512,896], index: 8, kind: input, shape index: {}]   ;;  %s5720_s9 = inlined_call_operand.vmem [shape: f32[1,896], index: 9, kind: input, shape index: {}]   ;;  %s5721_s10 = inlined_call_operand.hbm [shape: f32[8,896], index: 10, kind: output, shape index: {0}]   ;;  %s5722_s11 = inlined_call_operand.hbm [shape: f32[1,1], index: 11, kind: output, shape index: {1}]  }
   0x1   :  { %18 = vsyncpa [#allocation7], 0 }
   0x2   :  { %19 = vsyncpa [#allocation4], 0 }
   0x3   :  { %20 = vsyncpa [#allocation5], 0  ;;  %s5253_s17 = smov [#allocation2]   ;;  %s5169_s21 = scalar_lea.hbm %s5713_s2, 25088 }
   0x4   :  { %s30_s18 = sshll.u32 %s5253_s17, 4  ;;  %p5170_p0 = scmp.ne.s32.totalorder %s5713_s2, %s5169_s21  ;;  %s31_s18 = int_to_ptr.vmem [resolvable:$true] %s30_s18 }
   0x5   :  { %p5173_p1 = scmp.lt.u32.totalorder %s5169_s21, %s5713_s2 }
   0x7   :  { %p5175_p2 = pnand %p5173_p1, %p5170_p0 }
   0x9   :  { %5178 = shalt.err (!%p5175_p2)
}
   0xa   :  { %s5179_s26 = scalar_lea.vmem %s31_s18, 25088  ;;  %p5184_p4 = scmp.lt.s32.totalorder %s31_s18, %s31_s18 }
   0xb   :  { %p5180_p3 = scmp.ne.s32.totalorder %s31_s18, %s5179_s26  ;;  %p5185_p5 = scmp.lt.s32.totalorder %s5179_s26, %s5179_s26 }
   0xd   :  { %p5186_p6 = por %p5185_p5, %p5184_p4 }
   0xf   :  { %p5187_p7 = pnand %p5186_p6, %p5180_p3 }
  0x11   :  { %5190 = shalt.err (!%p5187_p7)
}
  0x12   :  { %s5254_s27 = smov 256   ;;  %s5255_s28 = smov 16  }
  0x13   :  { %36 = dma.hbm_to_vmem [thread:$0]  %s5713_s2, 25088, %s31_s18, [#allocation3], %s5254_s27, %s5254_s27, %s5255_s28  }
  0x14   :  { %s5256_s12 = smov [#allocation6]   ;;  %s5191_s16 = scalar_lea.hbm %s5719_s8, 28672 }
  0x15   :  { %s52_s13 = sshll.u32 %s5256_s12, 4  ;;  %p5192_p8 = scmp.ne.s32.totalorder %s5719_s8, %s5191_s16  ;;  %s53_s13 = int_to_ptr.vmem [resolvable:$true] %s52_s13 }
  0x16   :  { %p5195_p9 = scmp.lt.u32.totalorder %s5191_s16, %s5719_s8 }
  0x18   :  { %p5197_p10 = pnand %p5195_p9, %p5192_p8 }
  0x1a   :  { %5200 = shalt.err (!%p5197_p10)
}
  0x1b   :  { %s5201_s22 = scalar_lea.vmem %s53_s13, 28672  ;;  %p5206_p12 = scmp.lt.s32.totalorder %s53_s13, %s53_s13 }
  0x1c   :  { %p5202_p11 = scmp.ne.s32.totalorder %s53_s13, %s5201_s22  ;;  %p5207_p13 = scmp.lt.s32.totalorder %s5201_s22, %s5201_s22 }
  0x1e   :  { %p5208_p0 = por %p5207_p13, %p5206_p12 }
  0x20   :  { %p5209_p1 = pnand %p5208_p0, %p5202_p11 }
  0x22   :  { %5212 = shalt.err (!%p5209_p1)
}
  0x23   :  { %s5257_s2 = smov 448   ;;  %s5258_s18 = smov 28  }
  0x24   :  { %58 = dma.hbm_to_vmem [thread:$0]  %s5719_s8, 28672, %s53_s13, [#allocation7], %s5257_s2, %s5257_s2, %s5258_s18  }
  0x25   :  { %5245 = dma.done.wait [#allocation3], 25088  }
  0x26   :  { %5246 = vsyncadd [#allocation3], 4294942208 }
  0x27   :  { %5247 = dma.done.wait [#allocation7], 28672  }
  0x28   :  { %5248 = vsyncadd [#allocation7], 4294938624  ;;  %v4518_v0 = vld [vmem:[#allocation2 + $0x4] ss:$16 sps:$4 sm:$0xff]   ;;  %v4520_v1 = vld [vmem:[#allocation2 + $0xc] ss:$16 sps:$4 sm:$0xff]  }
  0x29   :  { %1298 = vmatprep.subr.bf16.mxu0 %v4518_v0  ;;  %v4522_v2 = vld [vmem:[#allocation2] ss:$16 sps:$4 sm:$0xff]   ;;  %v4523_v3 = vld [vmem:[#allocation2 + $0x8] ss:$16 sps:$4 sm:$0xff]   ;;  %1462 = vmatprep.subr.bf16.mxu1 %v4520_v1  ;;  %v4524_v4 = vld [vmem:[#allocation2 + $0x24] ss:$16 sps:$4 sm:$0xff]  }
  0x2a   :  { %1299 = vmatpush1.bf16.msra.mxu0 %v4522_v2  ;;  %1463 = vmatpush1.bf16.msra.mxu1 %v4523_v3  ;;  %v4526_v5 = vld [vmem:[#allocation2 + $0x2c] ss:$16 sps:$4 sm:$0xff]   ;;  %v4528_v6 = vld [vmem:[#allocation2 + $0x20] ss:$16 sps:$4 sm:$0xff]   ;;  %v4529_v7 = vld [vmem:[#allocation2 + $0x28] ss:$16 sps:$4 sm:$0xff]  }
  0x2b   :  { %1300 = vmatprep.subr.bf16.mxu0 %v4524_v4  ;;  %1464 = vmatprep.subr.bf16.mxu1 %v4526_v5  ;;  %v4530_v8 = vld [vmem:[#allocation2 + $0x44] ss:$16 sps:$4 sm:$0xff]   ;;  %v4532_v9 = vld [vmem:[#allocation2 + $0x4c] ss:$16 sps:$4 sm:$0xff]   ;;  %v4534_v10 = vld [vmem:[#allocation2 + $0x40] ss:$16 sps:$4 sm:$0xff]  }
  0x2c   :  { %v4535_v11 = vld [vmem:[#allocation2 + $0x48] ss:$16 sps:$4 sm:$0xff]   ;;  %v4536_v12 = vld [vmem:[#allocation2 + $0x64] ss:$16 sps:$4 sm:$0xff]   ;;  %v4538_v13 = vld [vmem:[#allocation2 + $0x6c] ss:$16 sps:$4 sm:$0xff]  }
  0x2d   :  { %v4540_v14 = vld [vmem:[#allocation2 + $0x60] ss:$16 sps:$4 sm:$0xff]   ;;  %v4541_v15 = vld [vmem:[#allocation2 + $0x68] ss:$16 sps:$4 sm:$0xff]   ;;  %v4542_v16 = vld [vmem:[#allocation2 + $0x84] ss:$16 sps:$4 sm:$0xff]  }
  0x2e   :  { %1301 = vmatpush1.bf16.msra.mxu0 %v4528_v6  ;;  %1465 = vmatpush1.bf16.msra.mxu1 %v4529_v7  ;;  %v4544_v17 = vld [vmem:[#allocation2 + $0x8c] ss:$16 sps:$4 sm:$0xff]   ;;  %v4546_v18 = vld [vmem:[#allocation2 + $0x80] ss:$16 sps:$4 sm:$0xff]   ;;  %v4547_v19 = vld [vmem:[#allocation2 + $0x88] ss:$16 sps:$4 sm:$0xff]  }
  0x2f   :  { %1302 = vmatprep.subr.bf16.mxu0 %v4530_v8  ;;  %1466 = vmatprep.subr.bf16.mxu1 %v4532_v9  ;;  %v4548_v20 = vld [vmem:[#allocation2 + $0xa4] ss:$16 sps:$4 sm:$0xff]   ;;  %v4550_v21 = vld [vmem:[#allocation2 + $0xac] ss:$16 sps:$4 sm:$0xff]   ;;  %v4552_v22 = vld [vmem:[#allocation2 + $0xa0] ss:$16 sps:$4 sm:$0xff]  }
  0x30   :  { %v4553_v23 = vld [vmem:[#allocation2 + $0xa8] ss:$16 sps:$4 sm:$0xff]   ;;  %v4554_v24 = vld [vmem:[#allocation2 + $0xc4] ss:$16 sps:$4 sm:$0xff]   ;;  %v4556_v25 = vld [vmem:[#allocation2 + $0xcc] ss:$16 sps:$4 sm:$0xff]  }
  0x31   :  { %v4558_v26 = vld [vmem:[#allocation2 + $0xc0] ss:$16 sps:$4 sm:$0xff]   ;;  %v4559_v27 = vld [vmem:[#allocation2 + $0xc8] ss:$16 sps:$4 sm:$0xff]   ;;  %v4560_v28 = vld [vmem:[#allocation2 + $0xe4] ss:$16 sps:$4 sm:$0xff]  }
  0x32   :  { %1303 = vmatpush1.bf16.msra.mxu0 %v4534_v10  ;;  %1467 = vmatpush1.bf16.msra.mxu1 %v4535_v11  ;;  %v4562_v29 = vld [vmem:[#allocation2 + $0xec] ss:$16 sps:$4 sm:$0xff]   ;;  %v4564_v30 = vld [vmem:[#allocation2 + $0xe0] ss:$16 sps:$4 sm:$0xff]   ;;  %v4565_v31 = vld [vmem:[#allocation2 + $0xe8] ss:$16 sps:$4 sm:$0xff]  }
  0x33   :  { %1304 = vmatprep.subr.bf16.mxu0 %v4536_v12  ;;  %1468 = vmatprep.subr.bf16.mxu1 %v4538_v13  ;;  %v4566_v32 = vld [vmem:[#allocation2 + $0x104] ss:$16 sps:$4 sm:$0xff]   ;;  %v4568_v33 = vld [vmem:[#allocation2 + $0x10c] ss:$16 sps:$4 sm:$0xff]   ;;  %v4570_v34 = vld [vmem:[#allocation2 + $0x100] ss:$16 sps:$4 sm:$0xff]  }
  0x34   :  { %v4571_v35 = vld [vmem:[#allocation2 + $0x108] ss:$16 sps:$4 sm:$0xff]   ;;  %v4572_v36 = vld [vmem:[#allocation2 + $0x124] ss:$16 sps:$4 sm:$0xff]   ;;  %v4574_v37 = vld [vmem:[#allocation2 + $0x12c] ss:$16 sps:$4 sm:$0xff]  }
  0x35   :  { %v4576_v38 = vld [vmem:[#allocation2 + $0x120] ss:$16 sps:$4 sm:$0xff]   ;;  %v4577_v39 = vld [vmem:[#allocation2 + $0x128] ss:$16 sps:$4 sm:$0xff]   ;;  %v4578_v40 = vld [vmem:[#allocation2 + $0x144] ss:$16 sps:$4 sm:$0xff]  }
  0x36   :  { %1305 = vmatpush1.bf16.msra.mxu0 %v4540_v14  ;;  %1469 = vmatpush1.bf16.msra.mxu1 %v4541_v15  ;;  %v4580_v41 = vld [vmem:[#allocation2 + $0x14c] ss:$16 sps:$4 sm:$0xff]   ;;  %v4582_v42 = vld [vmem:[#allocation2 + $0x140] ss:$16 sps:$4 sm:$0xff]   ;;  %v4583_v43 = vld [vmem:[#allocation2 + $0x148] ss:$16 sps:$4 sm:$0xff]  }
  0x37   :  { %1306 = vmatprep.subr.bf16.mxu0 %v4542_v16  ;;  %1470 = vmatprep.subr.bf16.mxu1 %v4544_v17  ;;  %v4584_v44 = vld [vmem:[#allocation2 + $0x164] ss:$16 sps:$4 sm:$0xff]   ;;  %v4586_v45 = vld [vmem:[#allocation2 + $0x16c] ss:$16 sps:$4 sm:$0xff]   ;;  %v4588_v47 = vld [vmem:[#allocation2 + $0x160] ss:$16 sps:$4 sm:$0xff]  }
  0x38   :  { %v68_v46 = vld [vmem:[%s5711_s0] sm:$0xff]  ;;  %v4589_v49 = vld [vmem:[#allocation2 + $0x168] ss:$16 sps:$4 sm:$0xff]   ;;  %v4592_v51 = vld [vmem:[#allocation2 + $0x18c] ss:$16 sps:$4 sm:$0xff]   ;;  %v5259_v13 = vmov 0  }
  0x39   :  { %v3839_v48 = vcombine.high %v68_v46, %v68_v46  ;;  %v4590_v50 = vld [vmem:[#allocation2 + $0x184] ss:$16 sps:$4 sm:$0xff]   ;;  %v4594_v52 = vld [vmem:[#allocation2 + $0x180] ss:$16 sps:$4 sm:$0xff]   ;;  %v4595_v53 = vld [vmem:[#allocation2 + $0x188] ss:$16 sps:$4 sm:$0xff]   ;;  %v3838_v4 = vcombine.low %v68_v46, %v68_v46  ;;  %4515 = vset.pattern.permute.xlu0 %v5259_v13 }
  0x3a   :  { %1307 = vmatpush1.bf16.msra.mxu0 %v4546_v18  ;;  %1471 = vmatpush1.bf16.msra.mxu1 %v4547_v19  ;;  %v4596_v54 = vld [vmem:[#allocation2 + $0x1a4] ss:$16 sps:$4 sm:$0xff]   ;;  %v4598_v55 = vld [vmem:[#allocation2 + $0x1ac] ss:$16 sps:$4 sm:$0xff]   ;;  %v4600_v56 = vld [vmem:[#allocation2 + $0x1a0] ss:$16 sps:$4 sm:$0xff]  }
  0x3b   :  { %1308 = vmatprep.subr.bf16.mxu0 %v4548_v20  ;;  %1472 = vmatprep.subr.bf16.mxu1 %v4550_v21  ;;  %v4601_v57 = vld [vmem:[#allocation2 + $0x1a8] ss:$16 sps:$4 sm:$0xff]   ;;  %v4602_v58 = vld [vmem:[#allocation2 + $0x1c4] ss:$16 sps:$4 sm:$0xff]   ;;  %v4604_v59 = vld [vmem:[#allocation2 + $0x1cc] ss:$16 sps:$4 sm:$0xff]  }
  0x3c   :  { %1330 = vmatprep.mubr.bf16.mxu0 %v3839_v48  ;;  %1494 = vmatprep.mubr.bf16.mxu1 %v3839_v48  ;;  %v4606_v60 = vld [vmem:[#allocation2 + $0x1c0] ss:$16 sps:$4 sm:$0xff]   ;;  %v4607_v61 = vld [vmem:[#allocation2 + $0x1c8] ss:$16 sps:$4 sm:$0xff]   ;;  %v4608_v62 = vld [vmem:[#allocation2 + $0x1e4] ss:$16 sps:$4 sm:$0xff]  }
  0x3d   :  { %v4610_v63 = vld [vmem:[#allocation2 + $0x1ec] ss:$16 sps:$4 sm:$0xff]   ;;  %v4612_v0 = vld [vmem:[#allocation2 + $0x1e0] ss:$16 sps:$4 sm:$0xff]   ;;  %v4613_v1 = vld [vmem:[#allocation2 + $0x1e8] ss:$16 sps:$4 sm:$0xff]  }
  0x3e   :  { %1309 = vmatpush1.bf16.msra.mxu0 %v4552_v22  ;;  %1473 = vmatpush1.bf16.msra.mxu1 %v4553_v23  ;;  %v4618_v2 = vld [vmem:[#allocation2 + $0x204] ss:$16 sps:$4 sm:$0xff]   ;;  %v4621_v3 = vld [vmem:[#allocation2 + $0x20c] ss:$16 sps:$4 sm:$0xff]   ;;  %v4616_v5 = vld [vmem:[#allocation2 + $0x200] ss:$16 sps:$4 sm:$0xff]  }
  0x3f   :  { %1310 = vmatprep.subr.bf16.mxu0 %v4554_v24  ;;  %1474 = vmatprep.subr.bf16.mxu1 %v4556_v25  ;;  %v4619_v6 = vld [vmem:[#allocation2 + $0x208] ss:$16 sps:$4 sm:$0xff]   ;;  %v4624_v7 = vld [vmem:[#allocation2 + $0x224] ss:$16 sps:$4 sm:$0xff]   ;;  %v4627_v8 = vld [vmem:[#allocation2 + $0x22c] ss:$16 sps:$4 sm:$0xff]  }
  0x40   :  { %v4622_v9 = vld [vmem:[#allocation2 + $0x220] ss:$16 sps:$4 sm:$0xff]   ;;  %v4625_v10 = vld [vmem:[#allocation2 + $0x228] ss:$16 sps:$4 sm:$0xff]   ;;  %v4630_v11 = vld [vmem:[#allocation2 + $0x244] ss:$16 sps:$4 sm:$0xff]  }
  0x41   :  { %v4633_v12 = vld [vmem:[#allocation2 + $0x24c] ss:$16 sps:$4 sm:$0xff]   ;;  %v4628_v14 = vld [vmem:[#allocation2 + $0x240] ss:$16 sps:$4 sm:$0xff]   ;;  %v4631_v15 = vld [vmem:[#allocation2 + $0x248] ss:$16 sps:$4 sm:$0xff]  }
  0x42   :  { %1311 = vmatpush1.bf16.msra.mxu0 %v4558_v26  ;;  %1475 = vmatpush1.bf16.msra.mxu1 %v4559_v27  ;;  %v4636_v16 = vld [vmem:[#allocation2 + $0x264] ss:$16 sps:$4 sm:$0xff]   ;;  %v4639_v17 = vld [vmem:[#allocation2 + $0x26c] ss:$16 sps:$4 sm:$0xff]   ;;  %v4634_v18 = vld [vmem:[#allocation2 + $0x260] ss:$16 sps:$4 sm:$0xff]  }
  0x43   :  { %1312 = vmatprep.subr.bf16.mxu0 %v4560_v28  ;;  %1476 = vmatprep.subr.bf16.mxu1 %v4562_v29  ;;  %v4637_v19 = vld [vmem:[#allocation2 + $0x268] ss:$16 sps:$4 sm:$0xff]   ;;  %v4642_v20 = vld [vmem:[#allocation2 + $0x284] ss:$16 sps:$4 sm:$0xff]   ;;  %v4645_v21 = vld [vmem:[#allocation2 + $0x28c] ss:$16 sps:$4 sm:$0xff]  }
  0x44   :  { %v4640_v22 = vld [vmem:[#allocation2 + $0x280] ss:$16 sps:$4 sm:$0xff]   ;;  %v4643_v23 = vld [vmem:[#allocation2 + $0x288] ss:$16 sps:$4 sm:$0xff]   ;;  %v4648_v24 = vld [vmem:[#allocation2 + $0x2a4] ss:$16 sps:$4 sm:$0xff]  }
  0x45   :  { %v4651_v25 = vld [vmem:[#allocation2 + $0x2ac] ss:$16 sps:$4 sm:$0xff]   ;;  %v4646_v26 = vld [vmem:[#allocation2 + $0x2a0] ss:$16 sps:$4 sm:$0xff]   ;;  %v4649_v27 = vld [vmem:[#allocation2 + $0x2a8] ss:$16 sps:$4 sm:$0xff]  }
  0x46   :  { %1313 = vmatpush1.bf16.msra.mxu0 %v4564_v30  ;;  %1477 = vmatpush1.bf16.msra.mxu1 %v4565_v31  ;;  %v4654_v28 = vld [vmem:[#allocation2 + $0x2c4] ss:$16 sps:$4 sm:$0xff]   ;;  %v4657_v29 = vld [vmem:[#allocation2 + $0x2cc] ss:$16 sps:$4 sm:$0xff]   ;;  %v4676_v48 = vld [vmem:[#allocation2 + $0x340] ss:$16 sps:$4 sm:$0xff]  }
  0x47   :  { %1314 = vmatprep.subr.bf16.mxu0 %v4566_v32  ;;  %1478 = vmatprep.subr.bf16.mxu1 %v4568_v33  ;;  %v5356_v30 = vld [vmem:[%s5711_s0 + $0x8] sm:$0xff]  ;;  %v4652_v32 = vld [vmem:[#allocation2 + $0x2c0] ss:$16 sps:$4 sm:$0xff]   ;;  %v4678_v46 = vld [vmem:[#allocation2 + $0x344] ss:$16 sps:$4 sm:$0xff]   ;;  %vm1294_vm0 = vcmask 130048  }
  0x48   :  { %v3841_v31 = vcombine.high %v5356_v30, %v5356_v30  ;;  %v4655_v33 = vld [vmem:[#allocation2 + $0x2c8] ss:$16 sps:$4 sm:$0xff]   ;;  %vm1871_vm1 = vcmask 15360   ;;  %vm1876_vm2 = vcmask 7168  }
  0x4a   :  { %1315 = vmatpush1.bf16.msra.mxu0 %v4570_v34  ;;  %1479 = vmatpush1.bf16.msra.mxu1 %v4571_v35  ;;  %v4660_v34 = vld [vmem:[#allocation2 + $0x2e4] ss:$16 sps:$4 sm:$0xff]   ;;  %v4663_v35 = vld [vmem:[#allocation2 + $0x2ec] ss:$16 sps:$4 sm:$0xff]  }
  0x4b   :  { %1316 = vmatprep.subr.bf16.mxu0 %v4572_v36  ;;  %1480 = vmatprep.subr.bf16.mxu1 %v4574_v37  ;;  %v4658_v36 = vld [vmem:[#allocation2 + $0x2e0] ss:$16 sps:$4 sm:$0xff]   ;;  %v4661_v37 = vld [vmem:[#allocation2 + $0x2e8] ss:$16 sps:$4 sm:$0xff]  }
  0x4e   :  { %1317 = vmatpush1.bf16.msra.mxu0 %v4576_v38  ;;  %1481 = vmatpush1.bf16.msra.mxu1 %v4577_v39  ;;  %v4666_v38 = vld [vmem:[#allocation2 + $0x304] ss:$16 sps:$4 sm:$0xff]   ;;  %v4669_v39 = vld [vmem:[#allocation2 + $0x30c] ss:$16 sps:$4 sm:$0xff]  }
  0x4f   :  { %1318 = vmatprep.subr.bf16.mxu0 %v4578_v40  ;;  %1482 = vmatprep.subr.bf16.mxu1 %v4580_v41  ;;  %v4664_v40 = vld [vmem:[#allocation2 + $0x300] ss:$16 sps:$4 sm:$0xff]   ;;  %v4667_v41 = vld [vmem:[#allocation2 + $0x308] ss:$16 sps:$4 sm:$0xff]  }
  0x52   :  { %1319 = vmatpush1.bf16.msra.mxu0 %v4582_v42  ;;  %1483 = vmatpush1.bf16.msra.mxu1 %v4583_v43  ;;  %v4672_v42 = vld [vmem:[#allocation2 + $0x324] ss:$16 sps:$4 sm:$0xff]   ;;  %v4675_v43 = vld [vmem:[#allocation2 + $0x32c] ss:$16 sps:$4 sm:$0xff]  }
  0x53   :  { %1320 = vmatprep.subr.bf16.mxu0 %v4584_v44  ;;  %1484 = vmatprep.subr.bf16.mxu1 %v4586_v45  ;;  %v4670_v44 = vld [vmem:[#allocation2 + $0x320] ss:$16 sps:$4 sm:$0xff]   ;;  %v4673_v45 = vld [vmem:[#allocation2 + $0x328] ss:$16 sps:$4 sm:$0xff]  }
  0x56   :  { %1321 = vmatpush1.bf16.msra.mxu0 %v4588_v47  ;;  %1485 = vmatpush1.bf16.msra.mxu1 %v4589_v49  ;;  %v4681_v47 = vld [vmem:[#allocation2 + $0x34c] ss:$16 sps:$4 sm:$0xff]   ;;  %v4679_v49 = vld [vmem:[#allocation2 + $0x348] ss:$16 sps:$4 sm:$0xff]  }
  0x57   :  { %1322 = vmatprep.subr.bf16.mxu0 %v4590_v50  ;;  %1486 = vmatprep.subr.bf16.mxu1 %v4592_v51  ;;  %v4684_v50 = vld [vmem:[#allocation2 + $0x364] ss:$16 sps:$4 sm:$0xff]   ;;  %v4687_v51 = vld [vmem:[#allocation2 + $0x36c] ss:$16 sps:$4 sm:$0xff]  }
  0x5a   :  { %1323 = vmatpush1.bf16.msra.mxu0 %v4594_v52  ;;  %1487 = vmatpush1.bf16.msra.mxu1 %v4595_v53  ;;  %v4682_v52 = vld [vmem:[#allocation2 + $0x360] ss:$16 sps:$4 sm:$0xff]   ;;  %v4685_v53 = vld [vmem:[#allocation2 + $0x368] ss:$16 sps:$4 sm:$0xff]  }
  0x5b   :  { %1324 = vmatprep.subr.bf16.mxu0 %v4596_v54  ;;  %1488 = vmatprep.subr.bf16.mxu1 %v4598_v55  ;;  %v4690_v54 = vld [vmem:[#allocation2 + $0x384] ss:$16 sps:$4 sm:$0xff]   ;;  %v4693_v55 = vld [vmem:[#allocation2 + $0x38c] ss:$16 sps:$4 sm:$0xff]  }
  0x5e   :  { %1325 = vmatpush1.bf16.msra.mxu0 %v4600_v56  ;;  %1489 = vmatpush1.bf16.msra.mxu1 %v4601_v57  ;;  %v4688_v56 = vld [vmem:[#allocation2 + $0x380] ss:$16 sps:$4 sm:$0xff]   ;;  %v4691_v57 = vld [vmem:[#allocation2 + $0x388] ss:$16 sps:$4 sm:$0xff]  }
  0x5f   :  { %1326 = vmatprep.subr.bf16.mxu0 %v4602_v58  ;;  %1490 = vmatprep.subr.bf16.mxu1 %v4604_v59  ;;  %v4696_v58 = vld [vmem:[#allocation2 + $0x3a4] ss:$16 sps:$4 sm:$0xff]   ;;  %v4699_v59 = vld [vmem:[#allocation2 + $0x3ac] ss:$16 sps:$4 sm:$0xff]  }
  0x62   :  { %1327 = vmatpush1.bf16.msra.mxu0 %v4606_v60  ;;  %1491 = vmatpush1.bf16.msra.mxu1 %v4607_v61  ;;  %v4694_v60 = vld [vmem:[#allocation2 + $0x3a0] ss:$16 sps:$4 sm:$0xff]   ;;  %v4697_v61 = vld [vmem:[#allocation2 + $0x3a8] ss:$16 sps:$4 sm:$0xff]  }
  0x63   :  { %1328 = vmatprep.subr.bf16.mxu0 %v4608_v62  ;;  %1492 = vmatprep.subr.bf16.mxu1 %v4610_v63  ;;  %v4702_v62 = vld [vmem:[#allocation2 + $0x3c4] ss:$16 sps:$4 sm:$0xff]   ;;  %v4705_v63 = vld [vmem:[#allocation2 + $0x3cc] ss:$16 sps:$4 sm:$0xff]  }
  0x66   :  { %1329 = vmatpush1.bf16.msra.mxu0 %v4612_v0  ;;  %1493 = vmatpush1.bf16.msra.mxu1 %v4613_v1  ;;  %v4700_v0 = vld [vmem:[#allocation2 + $0x3c0] ss:$16 sps:$4 sm:$0xff]   ;;  %v4703_v1 = vld [vmem:[#allocation2 + $0x3c8] ss:$16 sps:$4 sm:$0xff]  }
  0x67   :  { %1339 = vmatprep.subr.bf16.mxu0 %v4618_v2  ;;  %1503 = vmatprep.subr.bf16.mxu1 %v4621_v3  ;;  %v4708_v2 = vld [vmem:[#allocation2 + $0x3e4] ss:$16 sps:$4 sm:$0xff]   ;;  %v4711_v3 = vld [vmem:[#allocation2 + $0x3ec] ss:$16 sps:$4 sm:$0xff]  }
  0x69   :  { %1331 = vmatmul.mubr.bf16.vlgmr.msra.gmra.mrb[0].mxu0 %v3838_v4  ;;  %1495 = vmatmul.mubr.bf16.vlgmr.msra.gmra.mrb[0].mxu1 %v3838_v4  ;;  %v4706_v4 = vld [vmem:[#allocation2 + $0x3e0] ss:$16 sps:$4 sm:$0xff]  }
  0x6a   :  { %1340 = vmatpush1.bf16.msra.mxu0 %v4616_v5  ;;  %1504 = vmatpush1.bf16.msra.mxu1 %v4619_v6  ;;  %v4709_v5 = vld [vmem:[#allocation2 + $0x3e8] ss:$16 sps:$4 sm:$0xff]   ;;  %v4716_v6 = vld [vmem:[#allocation2 + $0x404] ss:$16 sps:$4 sm:$0xff]  }
  0x6b   :  { %1341 = vmatprep.subr.bf16.mxu0 %v4624_v7  ;;  %1505 = vmatprep.subr.bf16.mxu1 %v4627_v8  ;;  %v4719_v7 = vld [vmem:[#allocation2 + $0x40c] ss:$16 sps:$4 sm:$0xff]   ;;  %v3840_v8 = vcombine.low %v5356_v30, %v5356_v30  ;;  %v4746_v30 = vld [vmem:[#allocation2 + $0x4a4] ss:$16 sps:$4 sm:$0xff]  }
  0x6c   :  { %1371 = vmatprep.mubr.bf16.mxu0 %v3841_v31  ;;  %1535 = vmatprep.mubr.bf16.mxu1 %v3841_v31  ;;  %v4749_v31 = vld [vmem:[#allocation2 + $0x4ac] ss:$16 sps:$4 sm:$0xff]  }
  0x6e   :  { %1342 = vmatpush1.bf16.msra.mxu0 %v4622_v9  ;;  %1506 = vmatpush1.bf16.msra.mxu1 %v4625_v10  ;;  %v4714_v9 = vld [vmem:[#allocation2 + $0x400] ss:$16 sps:$4 sm:$0xff]   ;;  %v4717_v10 = vld [vmem:[#allocation2 + $0x408] ss:$16 sps:$4 sm:$0xff]  }
  0x6f   :  { %1343 = vmatprep.subr.bf16.mxu0 %v4630_v11  ;;  %1507 = vmatprep.subr.bf16.mxu1 %v4633_v12  ;;  %v4722_v11 = vld [vmem:[#allocation2 + $0x424] ss:$16 sps:$4 sm:$0xff]  }
  0x70   :  { %v5365_v12 = vld [vmem:[%s5711_s0 + $0x10] sm:$0xff] }
  0x72   :  { %1344 = vmatpush1.bf16.msra.mxu0 %v4628_v14  ;;  %1508 = vmatpush1.bf16.msra.mxu1 %v4631_v15  ;;  %v4725_v14 = vld [vmem:[#allocation2 + $0x42c] ss:$16 sps:$4 sm:$0xff]   ;;  %v3843_v15 = vcombine.high %v5365_v12, %v5365_v12 }
  0x73   :  { %1345 = vmatprep.subr.bf16.mxu0 %v4636_v16  ;;  %1509 = vmatprep.subr.bf16.mxu1 %v4639_v17  ;;  %v4720_v16 = vld [vmem:[#allocation2 + $0x420] ss:$16 sps:$4 sm:$0xff]   ;;  %v4723_v17 = vld [vmem:[#allocation2 + $0x428] ss:$16 sps:$4 sm:$0xff]  }
  0x76   :  { %1346 = vmatpush1.bf16.msra.mxu0 %v4634_v18  ;;  %1510 = vmatpush1.bf16.msra.mxu1 %v4637_v19  ;;  %v4728_v18 = vld [vmem:[#allocation2 + $0x444] ss:$16 sps:$4 sm:$0xff]   ;;  %v4731_v19 = vld [vmem:[#allocation2 + $0x44c] ss:$16 sps:$4 sm:$0xff]  }
  0x77   :  { %1347 = vmatprep.subr.bf16.mxu0 %v4642_v20  ;;  %1511 = vmatprep.subr.bf16.mxu1 %v4645_v21  ;;  %v4726_v20 = vld [vmem:[#allocation2 + $0x440] ss:$16 sps:$4 sm:$0xff]   ;;  %v4729_v21 = vld [vmem:[#allocation2 + $0x448] ss:$16 sps:$4 sm:$0xff]  }
  0x7a   :  { %1348 = vmatpush1.bf16.msra.mxu0 %v4640_v22  ;;  %1512 = vmatpush1.bf16.msra.mxu1 %v4643_v23  ;;  %v4734_v22 = vld [vmem:[#allocation2 + $0x464] ss:$16 sps:$4 sm:$0xff]   ;;  %v4737_v23 = vld [vmem:[#allocation2 + $0x46c] ss:$16 sps:$4 sm:$0xff]  }
  0x7b   :  { %1349 = vmatprep.subr.bf16.mxu0 %v4648_v24  ;;  %1513 = vmatprep.subr.bf16.mxu1 %v4651_v25  ;;  %v4732_v24 = vld [vmem:[#allocation2 + $0x460] ss:$16 sps:$4 sm:$0xff]   ;;  %v4735_v25 = vld [vmem:[#allocation2 + $0x468] ss:$16 sps:$4 sm:$0xff]  }
  0x7e   :  { %1350 = vmatpush1.bf16.msra.mxu0 %v4646_v26  ;;  %1514 = vmatpush1.bf16.msra.mxu1 %v4649_v27  ;;  %v4740_v26 = vld [vmem:[#allocation2 + $0x484] ss:$16 sps:$4 sm:$0xff]   ;;  %v4743_v27 = vld [vmem:[#allocation2 + $0x48c] ss:$16 sps:$4 sm:$0xff]  }
  0x7f   :  { %1351 = vmatprep.subr.bf16.mxu0 %v4654_v28  ;;  %1515 = vmatprep.subr.bf16.mxu1 %v4657_v29  ;;  %v4738_v28 = vld [vmem:[#allocation2 + $0x480] ss:$16 sps:$4 sm:$0xff]   ;;  %v4741_v29 = vld [vmem:[#allocation2 + $0x488] ss:$16 sps:$4 sm:$0xff]  }
  0x82   :  { %1352 = vmatpush1.bf16.msra.mxu0 %v4652_v32  ;;  %1516 = vmatpush1.bf16.msra.mxu1 %v4655_v33  ;;  %v4744_v32 = vld [vmem:[#allocation2 + $0x4a0] ss:$16 sps:$4 sm:$0xff]   ;;  %v4747_v33 = vld [vmem:[#allocation2 + $0x4a8] ss:$16 sps:$4 sm:$0xff]  }
  0x83   :  { %1353 = vmatprep.subr.bf16.mxu0 %v4660_v34  ;;  %1517 = vmatprep.subr.bf16.mxu1 %v4663_v35  ;;  %v4752_v34 = vld [vmem:[#allocation2 + $0x4c4] ss:$16 sps:$4 sm:$0xff]   ;;  %v4755_v35 = vld [vmem:[#allocation2 + $0x4cc] ss:$16 sps:$4 sm:$0xff]  }
  0x86   :  { %1354 = vmatpush1.bf16.msra.mxu0 %v4658_v36  ;;  %1518 = vmatpush1.bf16.msra.mxu1 %v4661_v37  ;;  %v4750_v36 = vld [vmem:[#allocation2 + $0x4c0] ss:$16 sps:$4 sm:$0xff]   ;;  %v4753_v37 = vld [vmem:[#allocation2 + $0x4c8] ss:$16 sps:$4 sm:$0xff]  }
  0x87   :  { %1355 = vmatprep.subr.bf16.mxu0 %v4666_v38  ;;  %1519 = vmatprep.subr.bf16.mxu1 %v4669_v39  ;;  %v4758_v38 = vld [vmem:[#allocation2 + $0x4e4] ss:$16 sps:$4 sm:$0xff]   ;;  %v4761_v39 = vld [vmem:[#allocation2 + $0x4ec] ss:$16 sps:$4 sm:$0xff]  }
  0x8a   :  { %1356 = vmatpush1.bf16.msra.mxu0 %v4664_v40  ;;  %1520 = vmatpush1.bf16.msra.mxu1 %v4667_v41  ;;  %v4756_v40 = vld [vmem:[#allocation2 + $0x4e0] ss:$16 sps:$4 sm:$0xff]   ;;  %v4759_v41 = vld [vmem:[#allocation2 + $0x4e8] ss:$16 sps:$4 sm:$0xff]  }
  0x8b   :  { %1357 = vmatprep.subr.bf16.mxu0 %v4672_v42  ;;  %1521 = vmatprep.subr.bf16.mxu1 %v4675_v43  ;;  %v4764_v42 = vld [vmem:[#allocation2 + $0x504] ss:$16 sps:$4 sm:$0xff]   ;;  %v4767_v43 = vld [vmem:[#allocation2 + $0x50c] ss:$16 sps:$4 sm:$0xff]  }
  0x8e   :  { %1358 = vmatpush1.bf16.msra.mxu0 %v4670_v44  ;;  %1522 = vmatpush1.bf16.msra.mxu1 %v4673_v45  ;;  %v4762_v44 = vld [vmem:[#allocation2 + $0x500] ss:$16 sps:$4 sm:$0xff]   ;;  %v4765_v45 = vld [vmem:[#allocation2 + $0x508] ss:$16 sps:$4 sm:$0xff]  }
  0x8f   :  { %1359 = vmatprep.subr.bf16.mxu0 %v4678_v46  ;;  %1523 = vmatprep.subr.bf16.mxu1 %v4681_v47  ;;  %v4770_v46 = vld [vmem:[#allocation2 + $0x524] ss:$16 sps:$4 sm:$0xff]   ;;  %v4773_v47 = vld [vmem:[#allocation2 + $0x52c] ss:$16 sps:$4 sm:$0xff]  }
  0x92   :  { %1360 = vmatpush1.bf16.msra.mxu0 %v4676_v48  ;;  %1524 = vmatpush1.bf16.msra.mxu1 %v4679_v49  ;;  %v4768_v48 = vld [vmem:[#allocation2 + $0x520] ss:$16 sps:$4 sm:$0xff]   ;;  %v4771_v49 = vld [vmem:[#allocation2 + $0x528] ss:$16 sps:$4 sm:$0xff]  }
  0x93   :  { %1361 = vmatprep.subr.bf16.mxu0 %v4684_v50  ;;  %1525 = vmatprep.subr.bf16.mxu1 %v4687_v51  ;;  %v4776_v50 = vld [vmem:[#allocation2 + $0x544] ss:$16 sps:$4 sm:$0xff]   ;;  %v4779_v51 = vld [vmem:[#allocation2 + $0x54c] ss:$16 sps:$4 sm:$0xff]  }
  0x96   :  { %1362 = vmatpush1.bf16.msra.mxu0 %v4682_v52  ;;  %1526 = vmatpush1.bf16.msra.mxu1 %v4685_v53  ;;  %v4774_v52 = vld [vmem:[#allocation2 + $0x540] ss:$16 sps:$4 sm:$0xff]   ;;  %v4777_v53 = vld [vmem:[#allocation2 + $0x548] ss:$16 sps:$4 sm:$0xff]  }
  0x97   :  { %1363 = vmatprep.subr.bf16.mxu0 %v4690_v54  ;;  %1527 = vmatprep.subr.bf16.mxu1 %v4693_v55  ;;  %v4782_v54 = vld [vmem:[#allocation2 + $0x564] ss:$16 sps:$4 sm:$0xff]   ;;  %v4785_v55 = vld [vmem:[#allocation2 + $0x56c] ss:$16 sps:$4 sm:$0xff]  }
  0x9a   :  { %1364 = vmatpush1.bf16.msra.mxu0 %v4688_v56  ;;  %1528 = vmatpush1.bf16.msra.mxu1 %v4691_v57  ;;  %v4780_v56 = vld [vmem:[#allocation2 + $0x560] ss:$16 sps:$4 sm:$0xff]   ;;  %v4783_v57 = vld [vmem:[#allocation2 + $0x568] ss:$16 sps:$4 sm:$0xff]  }
  0x9b   :  { %1365 = vmatprep.subr.bf16.mxu0 %v4696_v58  ;;  %1529 = vmatprep.subr.bf16.mxu1 %v4699_v59  ;;  %v4788_v58 = vld [vmem:[#allocation2 + $0x584] ss:$16 sps:$4 sm:$0xff]   ;;  %v4791_v59 = vld [vmem:[#allocation2 + $0x58c] ss:$16 sps:$4 sm:$0xff]  }
  0x9e   :  { %1366 = vmatpush1.bf16.msra.mxu0 %v4694_v60  ;;  %1530 = vmatpush1.bf16.msra.mxu1 %v4697_v61  ;;  %v4786_v60 = vld [vmem:[#allocation2 + $0x580] ss:$16 sps:$4 sm:$0xff]   ;;  %v4789_v61 = vld [vmem:[#allocation2 + $0x588] ss:$16 sps:$4 sm:$0xff]  }
  0x9f   :  { %1367 = vmatprep.subr.bf16.mxu0 %v4702_v62  ;;  %1531 = vmatprep.subr.bf16.mxu1 %v4705_v63  ;;  %v4794_v62 = vld [vmem:[#allocation2 + $0x5a4] ss:$16 sps:$4 sm:$0xff]   ;;  %v4797_v63 = vld [vmem:[#allocation2 + $0x5ac] ss:$16 sps:$4 sm:$0xff]  }
  0xa2   :  { %1368 = vmatpush1.bf16.msra.mxu0 %v4700_v0  ;;  %1532 = vmatpush1.bf16.msra.mxu1 %v4703_v1  ;;  %v4792_v0 = vld [vmem:[#allocation2 + $0x5a0] ss:$16 sps:$4 sm:$0xff]   ;;  %v4795_v1 = vld [vmem:[#allocation2 + $0x5a8] ss:$16 sps:$4 sm:$0xff]  }
  0xa3   :  { %1369 = vmatprep.subr.bf16.mxu0 %v4708_v2  ;;  %1533 = vmatprep.subr.bf16.mxu1 %v4711_v3  ;;  %v4800_v2 = vld [vmem:[#allocation2 + $0x5c4] ss:$16 sps:$4 sm:$0xff]   ;;  %v4803_v3 = vld [vmem:[#allocation2 + $0x5cc] ss:$16 sps:$4 sm:$0xff]  }
  0xa6   :  { %1370 = vmatpush1.bf16.msra.mxu0 %v4706_v4  ;;  %1534 = vmatpush1.bf16.msra.mxu1 %v4709_v5  ;;  %v4798_v4 = vld [vmem:[#allocation2 + $0x5c0] ss:$16 sps:$4 sm:$0xff]   ;;  %v4801_v5 = vld [vmem:[#allocation2 + $0x5c8] ss:$16 sps:$4 sm:$0xff]  }
  0xa7   :  { %1380 = vmatprep.subr.bf16.mxu0 %v4716_v6  ;;  %1544 = vmatprep.subr.bf16.mxu1 %v4719_v7  ;;  %v4806_v6 = vld [vmem:[#allocation2 + $0x5e4] ss:$16 sps:$4 sm:$0xff]   ;;  %v4809_v7 = vld [vmem:[#allocation2 + $0x5ec] ss:$16 sps:$4 sm:$0xff]  }
  0xa9   :  { %1372 = vmatmul.mubr.bf16.vlgmr.msra.gmra.mrb[0].mxu0 %v3840_v8  ;;  %1536 = vmatmul.mubr.bf16.vlgmr.msra.gmra.mrb[0].mxu1 %v3840_v8  ;;  %v4804_v8 = vld [vmem:[#allocation2 + $0x5e0] ss:$16 sps:$4 sm:$0xff]  }
  0xaa   :  { %1381 = vmatpush1.bf16.msra.mxu0 %v4714_v9  ;;  %1545 = vmatpush1.bf16.msra.mxu1 %v4717_v10  ;;  %v4807_v9 = vld [vmem:[#allocation2 + $0x5e8] ss:$16 sps:$4 sm:$0xff]   ;;  %v4814_v10 = vld [vmem:[#allocation2 + $0x604] ss:$16 sps:$4 sm:$0xff]  }
  0xab   :  { %1382 = vmatprep.subr.bf16.mxu0 %v4722_v11  ;;  %1546 = vmatprep.subr.bf16.mxu1 %v4725_v14  ;;  %v4817_v11 = vld [vmem:[#allocation2 + $0x60c] ss:$16 sps:$4 sm:$0xff]   ;;  %v1646_v14 = vld [vmem:[%s5715_s4 + $0x80] sm:$0xff] }
  0xac   :  { %1412 = vmatprep.mubr.bf16.mxu0 %v3843_v15  ;;  %1576 = vmatprep.mubr.bf16.mxu1 %v3843_v15  ;;  %v1647_v15 = vld [vmem:[%s5715_s4 + $0x88] sm:$0xff] }
  0xae   :  { %1383 = vmatpush1.bf16.msra.mxu0 %v4720_v16  ;;  %1547 = vmatpush1.bf16.msra.mxu1 %v4723_v17  ;;  %v4812_v16 = vld [vmem:[#allocation2 + $0x600] ss:$16 sps:$4 sm:$0xff]   ;;  %v4815_v17 = vld [vmem:[#allocation2 + $0x608] ss:$16 sps:$4 sm:$0xff]  }
  0xaf   :  { %1384 = vmatprep.subr.bf16.mxu0 %v4728_v18  ;;  %1548 = vmatprep.subr.bf16.mxu1 %v4731_v19  ;;  %v3842_v18 = vcombine.low %v5365_v12, %v5365_v12  ;;  %v4391_v19 = vpack.c.bf16 %v1647_v15, %v1646_v14  ;;  %v1631_v12 = vld [vmem:[%s5715_s4 + $0x8] sm:$0xff] }
  0xb2   :  { %1385 = vmatpush1.bf16.msra.mxu0 %v4726_v20  ;;  %1549 = vmatpush1.bf16.msra.mxu1 %v4729_v21  ;;  %v1630_v20 = vld [vmem:[%s5715_s4] sm:$0xff]  ;;  %v1648_v21 = vld [vmem:[%s5715_s4 + $0x90] sm:$0xff] }
  0xb3   :  { %1386 = vmatprep.subr.bf16.mxu0 %v4734_v22  ;;  %1550 = vmatprep.subr.bf16.mxu1 %v4737_v23  ;;  %v1649_v22 = vld [vmem:[%s5715_s4 + $0x98] sm:$0xff]  ;;  %v1632_v23 = vld [vmem:[%s5715_s4 + $0x10] sm:$0xff] }
  0xb6   :  { %1387 = vmatpush1.bf16.msra.mxu0 %v4732_v24  ;;  %1551 = vmatpush1.bf16.msra.mxu1 %v4735_v25  ;;  %v1633_v24 = vld [vmem:[%s5715_s4 + $0x18] sm:$0xff]  ;;  %v4393_v25 = vpack.c.bf16 %v1631_v12, %v1630_v20  ;;  %v1663_v20 = vld [vmem:[%s5715_s4 + $0x108] sm:$0xff] }
  0xb7   :  { %1388 = vmatprep.subr.bf16.mxu0 %v4740_v26  ;;  %1552 = vmatprep.subr.bf16.mxu1 %v4743_v27  ;;  %v1650_v26 = vld [vmem:[%s5715_s4 + $0xa0] sm:$0xff]  ;;  %v1651_v27 = vld [vmem:[%s5715_s4 + $0xa8] sm:$0xff] }
  0xba   :  { %1389 = vmatpush1.bf16.msra.mxu0 %v4738_v28  ;;  %1553 = vmatpush1.bf16.msra.mxu1 %v4741_v29  ;;  %v4395_v28 = vpack.c.bf16 %v1649_v22, %v1648_v21  ;;  %v1634_v29 = vld [vmem:[%s5715_s4 + $0x20] sm:$0xff] }
  0xbb   :  { %1390 = vmatprep.subr.bf16.mxu0 %v4746_v30  ;;  %1554 = vmatprep.subr.bf16.mxu1 %v4749_v31  ;;  %v1635_v30 = vld [vmem:[%s5715_s4 + $0x28] sm:$0xff]  ;;  %v4397_v31 = vpack.c.bf16 %v1633_v24, %v1632_v23  ;;  %v1680_v23 = vld [vmem:[%s5715_s4 + $0x190] sm:$0xff]  ;;  %v1681_v24 = vld [vmem:[%s5715_s4 + $0x198] sm:$0xff] }
  0xbe   :  { %1391 = vmatpush1.bf16.msra.mxu0 %v4744_v32  ;;  %1555 = vmatpush1.bf16.msra.mxu1 %v4747_v33  ;;  %v1652_v32 = vld [vmem:[%s5715_s4 + $0xb0] sm:$0xff]  ;;  %v1653_v33 = vld [vmem:[%s5715_s4 + $0xb8] sm:$0xff] }
  0xbf   :  { %1392 = vmatprep.subr.bf16.mxu0 %v4752_v34  ;;  %1556 = vmatprep.subr.bf16.mxu1 %v4755_v35  ;;  %v4399_v34 = vpack.c.bf16 %v1651_v27, %v1650_v26  ;;  %v1636_v35 = vld [vmem:[%s5715_s4 + $0x30] sm:$0xff] }
  0xc2   :  { %1393 = vmatpush1.bf16.msra.mxu0 %v4750_v36  ;;  %1557 = vmatpush1.bf16.msra.mxu1 %v4753_v37  ;;  %v1637_v36 = vld [vmem:[%s5715_s4 + $0x38] sm:$0xff]  ;;  %v4401_v37 = vpack.c.bf16 %v1635_v30, %v1634_v29  ;;  %v4427_v30 = vpack.c.bf16 %v1681_v24, %v1680_v23 }
  0xc3   :  { %1394 = vmatprep.subr.bf16.mxu0 %v4758_v38  ;;  %1558 = vmatprep.subr.bf16.mxu1 %v4761_v39  ;;  %v1654_v38 = vld [vmem:[%s5715_s4 + $0xc0] sm:$0xff]  ;;  %v1655_v39 = vld [vmem:[%s5715_s4 + $0xc8] sm:$0xff] }
  0xc6   :  { %1395 = vmatpush1.bf16.msra.mxu0 %v4756_v40  ;;  %1559 = vmatpush1.bf16.msra.mxu1 %v4759_v41  ;;  %v4403_v40 = vpack.c.bf16 %v1653_v33, %v1652_v32  ;;  %v1638_v41 = vld [vmem:[%s5715_s4 + $0x40] sm:$0xff]  ;;  %v1665_v32 = vld [vmem:[%s5715_s4 + $0x118] sm:$0xff] }
  0xc7   :  { %1396 = vmatprep.subr.bf16.mxu0 %v4764_v42  ;;  %1560 = vmatprep.subr.bf16.mxu1 %v4767_v43  ;;  %v1639_v42 = vld [vmem:[%s5715_s4 + $0x48] sm:$0xff]  ;;  %v4405_v43 = vpack.c.bf16 %v1637_v36, %v1636_v35 }
  0xc8   :  { %v1683_v35 = vld [vmem:[%s5715_s4 + $0x1a8] sm:$0xff] }
  0xca   :  { %1397 = vmatpush1.bf16.msra.mxu0 %v4762_v44  ;;  %1561 = vmatpush1.bf16.msra.mxu1 %v4765_v45  ;;  %v1656_v44 = vld [vmem:[%s5715_s4 + $0xd0] sm:$0xff]  ;;  %v1657_v45 = vld [vmem:[%s5715_s4 + $0xd8] sm:$0xff] }
  0xcb   :  { %1398 = vmatprep.subr.bf16.mxu0 %v4770_v46  ;;  %1562 = vmatprep.subr.bf16.mxu1 %v4773_v47  ;;  %v4407_v46 = vpack.c.bf16 %v1655_v39, %v1654_v38  ;;  %v1640_v47 = vld [vmem:[%s5715_s4 + $0x50] sm:$0xff]  ;;  %v1666_v38 = vld [vmem:[%s5715_s4 + $0x120] sm:$0xff]  ;;  %v1667_v39 = vld [vmem:[%s5715_s4 + $0x128] sm:$0xff] }
  0xce   :  { %1399 = vmatpush1.bf16.msra.mxu0 %v4768_v48  ;;  %1563 = vmatpush1.bf16.msra.mxu1 %v4771_v49  ;;  %v1641_v48 = vld [vmem:[%s5715_s4 + $0x58] sm:$0xff]  ;;  %v4409_v49 = vpack.c.bf16 %v1639_v42, %v1638_v41  ;;  %v4433_v42 = vpack.c.bf16 %v1667_v39, %v1666_v38  ;;  %v4839_v39 = vld [vmem:[#allocation6 + $0xac] ss:$28 sps:$4 sm:$0xff]  }
  0xcf   :  { %1400 = vmatprep.subr.bf16.mxu0 %v4776_v50  ;;  %1564 = vmatprep.subr.bf16.mxu1 %v4779_v51  ;;  %v1658_v50 = vld [vmem:[%s5715_s4 + $0xe0] sm:$0xff]  ;;  %v1659_v51 = vld [vmem:[%s5715_s4 + $0xe8] sm:$0xff]  ;;  %v1685_v41 = vld [vmem:[%s5715_s4 + $0x1b8] sm:$0xff] }
  0xd0   :  { %v4834_v38 = vld [vmem:[#allocation6 + $0x78] ss:$28 sps:$4 sm:$0xff]  }
  0xd2   :  { %1401 = vmatpush1.bf16.msra.mxu0 %v4774_v52  ;;  %1565 = vmatpush1.bf16.msra.mxu1 %v4777_v53  ;;  %v4411_v52 = vpack.c.bf16 %v1657_v45, %v1656_v44  ;;  %v1642_v53 = vld [vmem:[%s5715_s4 + $0x60] sm:$0xff]  ;;  %v1668_v44 = vld [vmem:[%s5715_s4 + $0x130] sm:$0xff]  ;;  %v1669_v45 = vld [vmem:[%s5715_s4 + $0x138] sm:$0xff] }
  0xd3   :  { %1402 = vmatprep.subr.bf16.mxu0 %v4782_v54  ;;  %1566 = vmatprep.subr.bf16.mxu1 %v4785_v55  ;;  %v1643_v54 = vld [vmem:[%s5715_s4 + $0x68] sm:$0xff]  ;;  %v4413_v55 = vpack.c.bf16 %v1641_v48, %v1640_v47  ;;  %v4437_v48 = vpack.c.bf16 %v1669_v45, %v1668_v44  ;;  %v4843_v45 = vld [vmem:[#allocation6 + $0xe0] ss:$28 sps:$4 sm:$0xff]  }
  0xd4   :  { %v1687_v47 = vld [vmem:[%s5715_s4 + $0x1c8] sm:$0xff] }
  0xd5   :  { %v4848_v44 = vld [vmem:[#allocation6 + $0xec] ss:$28 sps:$4 sm:$0xff]  }
  0xd6   :  { %1403 = vmatpush1.bf16.msra.mxu0 %v4780_v56  ;;  %1567 = vmatpush1.bf16.msra.mxu1 %v4783_v57  ;;  %v4415_v56 = vpack.c.bf16 %v1659_v51, %v1658_v50  ;;  %v4417_v57 = vpack.c.bf16 %v1643_v54, %v1642_v53  ;;  %v1670_v50 = vld [vmem:[%s5715_s4 + $0x140] sm:$0xff]  ;;  %v1671_v51 = vld [vmem:[%s5715_s4 + $0x148] sm:$0xff]  ;;  %v1689_v53 = vld [vmem:[%s5715_s4 + $0x1d8] sm:$0xff] }
  0xd7   :  { %1404 = vmatprep.subr.bf16.mxu0 %v4788_v58  ;;  %1568 = vmatprep.subr.bf16.mxu1 %v4791_v59  ;;  %v1660_v58 = vld [vmem:[%s5715_s4 + $0xf0] sm:$0xff]  ;;  %v1661_v59 = vld [vmem:[%s5715_s4 + $0xf8] sm:$0xff]  ;;  %v4441_v54 = vpack.c.bf16 %v1671_v51, %v1670_v50 }
  0xd8   :  { %v4852_v50 = vld [vmem:[#allocation6 + $0x120] ss:$28 sps:$4 sm:$0xff]   ;;  %v4857_v51 = vld [vmem:[#allocation6 + $0x154] ss:$28 sps:$4 sm:$0xff]  }
  0xda   :  { %1405 = vmatpush1.bf16.msra.mxu0 %v4786_v60  ;;  %1569 = vmatpush1.bf16.msra.mxu1 %v4789_v61  ;;  %v4419_v60 = vpack.c.bf16 %v1661_v59, %v1660_v58  ;;  %v1644_v61 = vld [vmem:[%s5715_s4 + $0x70] sm:$0xff]  ;;  %v1690_v58 = vld [vmem:[%s5715_s4 + $0x1e0] sm:$0xff]  ;;  %v1691_v59 = vld [vmem:[%s5715_s4 + $0x1e8] sm:$0xff] }
  0xdb   :  { %1406 = vmatprep.subr.bf16.mxu0 %v4794_v62  ;;  %1570 = vmatprep.subr.bf16.mxu1 %v4797_v63  ;;  %v1645_v62 = vld [vmem:[%s5715_s4 + $0x78] sm:$0xff] }
  0xdc   :  { %v4421_v63 = vpack.c.bf16 %v1645_v62, %v1644_v61  ;;  %v4447_v62 = vpack.c.bf16 %v1691_v59, %v1690_v58  ;;  %v4864_v58 = vld [vmem:[#allocation6 + $0x190] ss:$28 sps:$4 sm:$0xff]   ;;  %v4869_v59 = vld [vmem:[#allocation6 + $0x1c4] ss:$28 sps:$4 sm:$0xff]  }
  0xde   :  { %1407 = vmatpush1.bf16.msra.mxu0 %v4792_v0  ;;  %1571 = vmatpush1.bf16.msra.mxu1 %v4795_v1  ;;  %v1678_v0 = vld [vmem:[%s5715_s4 + $0x180] sm:$0xff]  ;;  %v1679_v1 = vld [vmem:[%s5715_s4 + $0x188] sm:$0xff] }
  0xdf   :  { %1408 = vmatprep.subr.bf16.mxu0 %v4800_v2  ;;  %1572 = vmatprep.subr.bf16.mxu1 %v4803_v3  ;;  %v4423_v2 = vpack.c.bf16 %v1679_v1, %v1678_v0  ;;  %v270_v3 = vlaneseq  ;;  %v1675_v0 = vld [vmem:[%s5715_s4 + $0x168] sm:$0xff]  ;;  %v1692_v1 = vld [vmem:[%s5715_s4 + $0x1f0] sm:$0xff] }
  0xe2   :  { %1409 = vmatpush1.bf16.msra.mxu0 %v4798_v4  ;;  %1573 = vmatpush1.bf16.msra.mxu1 %v4801_v5  ;;  %v5478_v4 = vshrl.u32 %v270_v3, 7 }
  0xe3   :  { %1410 = vmatprep.subr.bf16.mxu0 %v4806_v6  ;;  %1574 = vmatprep.subr.bf16.mxu1 %v4809_v7  ;;  %v5486_v6 = vld [vmem:[%s5714_s3] sm:$0xf] }
  0xe4   :  { %v5481_v5 = vsub.s32 0, %v5478_v4  ;;  %v5489_v7 = vsub.s32 1, %v5478_v4  ;;  %v5575_v61 = vsub.s32 2, %v5478_v4 }
  0xe6   :  { %1411 = vmatpush1.bf16.msra.mxu0 %v4804_v8  ;;  %1575 = vmatpush1.bf16.msra.mxu1 %v4807_v9  ;;  %v5492_v8 = vsub.s32 3, %v5478_v4  ;;  %v273_v9 = vrot.slane %v5486_v6, %v5481_v5 }
  0xe7   :  { %1421 = vmatprep.subr.bf16.mxu0 %v4814_v10  ;;  %1585 = vmatprep.subr.bf16.mxu1 %v4817_v11  ;;  %v277_v10 = vrot.slane %v5486_v6, %v5489_v7 }
  0xe8   :  { %v285_v11 = vrot.slane %v5486_v6, %v5492_v8 }
  0xe9   :  { %1413 = vmatmul.mubr.bf16.vlgmr.msra.gmra.mrb[0].mxu0 %v3842_v18  ;;  %1577 = vmatmul.mubr.bf16.vlgmr.msra.gmra.mrb[0].mxu1 %v3842_v18 }
  0xea   :  { %1422 = vmatpush1.bf16.msra.mxu0 %v4812_v16  ;;  %1586 = vmatpush1.bf16.msra.mxu1 %v4815_v17 }
  0xeb   :  { %1453 = vmatprep.mubr.bf16.mxu0 %v5259_v13  ;;  %1617 = vmatprep.mubr.bf16.mxu1 %v5259_v13  ;;  %v4818_v13 = vld [vmem:[%s5711_s0 + $0x18] ss:$0 sps:$4 sm:$0xff]   ;;  %s5262_s0 = smov 2  }
  0xec   :  { %4392 = vmatprep.subr.bf16.mxu1 %v4391_v19  ;;  %v1662_v19 = vld [vmem:[%s5715_s4 + $0x100] sm:$0xff] }
  0xf5   :  { %4041 = vmatmul.mubr.msk.bf16.vlgmr.msra.gmra.mrb[0].mxu0 %vm1294_vm0, %v4818_v13  ;;  %4042 = vmatmul.mubr.msk.bf16.vlgmr.msra.gmra.mrb[0].mxu1 %vm1294_vm0, %v4818_v13 }
  0xf6   :  { %4394 = vmatpush3.bf16.msra.mxu1 %v4393_v25 }
  0xf7   :  { %4396 = vmatprep.subr.bf16.mxu1 %v4395_v28  ;;  %v4425_v28 = vpack.c.bf16 %v1663_v20, %v1662_v19 }
  0xfa   :  { %4398 = vmatpush3.bf16.msra.mxu1 %v4397_v31  ;;  %v1664_v31 = vld [vmem:[%s5715_s4 + $0x110] sm:$0xff] }
  0xfb   :  { %4400 = vmatprep.subr.bf16.mxu1 %v4399_v34  ;;  %v1682_v34 = vld [vmem:[%s5715_s4 + $0x1a0] sm:$0xff]  ;;  %v4429_v36 = vpack.c.bf16 %v1665_v32, %v1664_v31  ;;  %v4825_v32 = vld [vmem:[#allocation6 + $0x38] ss:$28 sps:$4 sm:$0xff]  }
  0xfc   :  { %v4830_v31 = vld [vmem:[#allocation6 + $0x44] ss:$28 sps:$4 sm:$0xff]  }
  0xfe   :  { %4402 = vmatpush3.bf16.msra.mxu1 %v4401_v37  ;;  %v4431_v37 = vpack.c.bf16 %v1683_v35, %v1682_v34  ;;  %v4828_v34 = vld [vmem:[#allocation6 + $0x40] ss:$28 sps:$4 sm:$0xff]   ;;  %v4833_v35 = vld [vmem:[#allocation6 + $0x74] ss:$28 sps:$4 sm:$0xff]  }
  0xff   :  { %4404 = vmatprep.subr.bf16.mxu1 %v4403_v40  ;;  %v1684_v40 = vld [vmem:[%s5715_s4 + $0x1b0] sm:$0xff] }
 0x102   :  { %4406 = vmatpush3.bf16.msra.mxu1 %v4405_v43  ;;  %v4435_v43 = vpack.c.bf16 %v1685_v41, %v1684_v40  ;;  %v4842_v40 = vld [vmem:[#allocation6 + $0xb4] ss:$28 sps:$4 sm:$0xff]   ;;  %v4837_v41 = vld [vmem:[#allocation6 + $0xa8] ss:$28 sps:$4 sm:$0xff]  }
 0x103   :  { %4408 = vmatprep.subr.bf16.mxu1 %v4407_v46  ;;  %v1686_v46 = vld [vmem:[%s5715_s4 + $0x1c0] sm:$0xff] }
 0x106   :  { %4410 = vmatpush3.bf16.msra.mxu1 %v4409_v49  ;;  %v4439_v49 = vpack.c.bf16 %v1687_v47, %v1686_v46  ;;  %v4846_v46 = vld [vmem:[#allocation6 + $0xe8] ss:$28 sps:$4 sm:$0xff]   ;;  %v4851_v47 = vld [vmem:[#allocation6 + $0x11c] ss:$28 sps:$4 sm:$0xff]  }
 0x107   :  { %4412 = vmatprep.subr.bf16.mxu1 %v4411_v52  ;;  %v1688_v52 = vld [vmem:[%s5715_s4 + $0x1d0] sm:$0xff] }
 0x10a   :  { %4414 = vmatpush3.bf16.msra.mxu1 %v4413_v55  ;;  %v4443_v55 = vpack.c.bf16 %v1689_v53, %v1688_v52  ;;  %v4860_v52 = vld [vmem:[#allocation6 + $0x15c] ss:$28 sps:$4 sm:$0xff]   ;;  %v4855_v53 = vld [vmem:[#allocation6 + $0x150] ss:$28 sps:$4 sm:$0xff]  }
 0x10b   :  { %4416 = vmatprep.subr.bf16.mxu1 %v4415_v56  ;;  %v1672_v56 = vld [vmem:[%s5715_s4 + $0x150] sm:$0xff] }
 0x10e   :  { %4418 = vmatpush3.bf16.msra.mxu1 %v4417_v57  ;;  %v1673_v57 = vld [vmem:[%s5715_s4 + $0x158] sm:$0xff] }
 0x10f   :  { %4420 = vmatprep.subr.bf16.mxu1 %v4419_v60  ;;  %v4445_v60 = vpack.c.bf16 %v1673_v57, %v1672_v56  ;;  %v4866_v56 = vld [vmem:[#allocation6 + $0x194] ss:$28 sps:$4 sm:$0xff]   ;;  %v4861_v57 = vld [vmem:[#allocation6 + $0x188] ss:$28 sps:$4 sm:$0xff]  }
 0x112   :  { %4422 = vmatpush3.bf16.msra.mxu1 %v4421_v63  ;;  %v1674_v63 = vld [vmem:[%s5715_s4 + $0x160] sm:$0xff] }
 0x113   :  { %4424 = vmatprep.subr.bf16.mxu1 %v4423_v2  ;;  %v1693_v2 = vld [vmem:[%s5715_s4 + $0x1f8] sm:$0xff]  ;;  %v4449_v3 = vpack.c.bf16 %v1675_v0, %v1674_v63  ;;  %v4870_v63 = vld [vmem:[#allocation6 + $0x1c8] ss:$28 sps:$4 sm:$0xff]  }
 0x114   :  { %v4875_v0 = vld [vmem:[#allocation6 + $0x1fc] ss:$28 sps:$4 sm:$0xff]  }
 0x1c8   :  { %v1455_v14 = vpop.f32.mrb[0].mxu0  ;;  %v5500_v15 = vpop.f32.mrb[0].mxu1 }
 0x1c9   :  { %v4455_v16 = vadd.f32 %v1455_v14, %v273_v9  ;;  %v1457_v17 = vpop.f32.mrb[1].mxu0  ;;  %v1621_v18 = vpop.f32.mrb[1].mxu1  ;;  %v281_v9 = vrot.slane %v5486_v6, %v5575_v61  ;;  %v1677_v14 = vld [vmem:[%s5715_s4 + $0x178] sm:$0xff] }
 0x1ca   :  { %v4456_v12 = vadd.f32 %v1457_v17, %v277_v10  ;;  %v4458_v21 = vadd.f32 %v1621_v18, %v285_v11  ;;  %v1459_v22 = vpop.f32.mrb[2].mxu0  ;;  %v1623_v13 = vpop.f32.mrb[2].mxu1  ;;  %v4451_v10 = vpack.c.bf16 %v1693_v2, %v1692_v1  ;;  %v1676_v11 = vld [vmem:[%s5715_s4 + $0x170] sm:$0xff]  ;;  %s5261_s4 = smov 126   ;;  %v4878_v1 = vld [vmem:[#allocation6 + $0x204] ss:$28 sps:$4 sm:$0xff]  }
 0x1cb   :  { %v1460_v25 = vpop.f32.mrb[3].mxu0  ;;  %v1624_v26 = vpop.f32.mrb[3].mxu1  ;;  %v1626_v29 = vmax.f32 %v4455_v16, 0.0  ;;  %v4453_v16 = vpack.c.bf16 %v1677_v14, %v1676_v11  ;;  %v4457_v17 = vadd.f32 %v5500_v15, %v281_v9  ;;  %v5260_v15 = vmov 1   ;;  %v4873_v2 = vld [vmem:[#allocation6 + $0x1f8] ss:$28 sps:$4 sm:$0xff]  }
 0x1cc   :  { %v1627_v27 = vmax.f32 %v4456_v12, 0.0  ;;  %v1629_v33 = vmax.f32 %v4458_v21, 0.0  ;;  %v4043_v12 = vld [vmem:[%s5716_s5] ss:$0 sm:$0xff]  ;;  %4516 = vset.pattern.permute.xlu1 %v5260_v15  ;;  %v4881_v9 = vld [vmem:[#allocation6 + $0x234] ss:$28 sps:$4 sm:$0xff]  }
 0x1cd   :  { %v1628_v18 = vmax.f32 %v4457_v17, 0.0  ;;  %v4819_v26 = vld [vmem:[#allocation6] ss:$28 sps:$4 sm:$0xff]   ;;  %v4879_v11 = vld [vmem:[#allocation6 + $0x230] ss:$28 sps:$4 sm:$0xff]  }
 0x1ce   :  { %1765 = vmatprep.mubr.f32.mxu1 %v1627_v27  ;;  %v4821_v27 = vld [vmem:[#allocation6 + $0x4] ss:$28 sps:$4 sm:$0xff]   ;;  %v4882_v14 = vld [vmem:[#allocation6 + $0x238] ss:$28 sps:$4 sm:$0xff]  }
 0x1cf   :  { %1766 = vmatmul.mubr.f32.vlgmr.msra.gmra.mrb[4].mxu1 %v1626_v29  ;;  %v4824_v29 = vld [vmem:[#allocation6 + $0xc] ss:$28 sps:$4 sm:$0xff]   ;;  %3434 = vmatprep.subr.bf16.mxu0 %v4821_v27  ;;  %v4890_v17 = vld [vmem:[#allocation6 + $0x274] ss:$28 sps:$4 sm:$0xff]  }
 0x1d0   :  { %4426 = vmatpush3.bf16.msra.mxu1 %v4425_v28  ;;  %1835 = vmatprep.mubr.f32.mxu1 %v1629_v33  ;;  %v4822_v28 = vld [vmem:[#allocation6 + $0x8] ss:$28 sps:$4 sm:$0xff]  }
 0x1d1   :  { %4428 = vmatprep.subr.bf16.mxu1 %v4427_v30  ;;  %v4827_v30 = vld [vmem:[#allocation6 + $0x3c] ss:$28 sps:$4 sm:$0xff]   ;;  %3435 = vmatpush1.bf16.msra.mxu0 %v4819_v26  ;;  %v1843_v26 = vld [vmem:[%s5712_s1] sm:$0xff] }
 0x1d2   :  { %3436 = vmatprep.subr.bf16.mxu0 %v4827_v30  ;;  %v4905_v30 = vld [vmem:[#allocation6 + $0x314] ss:$28 sps:$4 sm:$0xff]  }
 0x1d4   :  { %4430 = vmatpush3.bf16.msra.mxu1 %v4429_v36  ;;  %v4836_v36 = vld [vmem:[#allocation6 + $0x7c] ss:$28 sps:$4 sm:$0xff]  }
 0x1d5   :  { %4432 = vmatprep.subr.bf16.mxu1 %v4431_v37  ;;  %3437 = vmatpush1.bf16.msra.mxu0 %v4825_v32  ;;  %v4831_v37 = vld [vmem:[#allocation6 + $0x70] ss:$28 sps:$4 sm:$0xff]  }
 0x1d6   :  { %3438 = vmatprep.subr.bf16.mxu0 %v4833_v35  ;;  %v4906_v35 = vld [vmem:[#allocation6 + $0x318] ss:$28 sps:$4 sm:$0xff]  }
 0x1d8   :  { %4434 = vmatpush3.bf16.msra.mxu1 %v4433_v42  ;;  %v4840_v42 = vld [vmem:[#allocation6 + $0xb0] ss:$28 sps:$4 sm:$0xff]  }
 0x1d9   :  { %4436 = vmatprep.subr.bf16.mxu1 %v4435_v43  ;;  %3439 = vmatpush1.bf16.msra.mxu0 %v4831_v37  ;;  %v4845_v43 = vld [vmem:[#allocation6 + $0xe4] ss:$28 sps:$4 sm:$0xff]   ;;  %v4914_v37 = vld [vmem:[#allocation6 + $0x354] ss:$28 sps:$4 sm:$0xff]  }
 0x1da   :  { %3440 = vmatprep.subr.bf16.mxu0 %v4839_v39  ;;  %v4912_v39 = vld [vmem:[#allocation6 + $0x350] ss:$28 sps:$4 sm:$0xff]  }
 0x1dc   :  { %4438 = vmatpush3.bf16.msra.mxu1 %v4437_v48  ;;  %v4854_v48 = vld [vmem:[#allocation6 + $0x124] ss:$28 sps:$4 sm:$0xff]  }
 0x1dd   :  { %4440 = vmatprep.subr.bf16.mxu1 %v4439_v49  ;;  %3441 = vmatpush1.bf16.msra.mxu0 %v4837_v41  ;;  %v4849_v49 = vld [vmem:[#allocation6 + $0x118] ss:$28 sps:$4 sm:$0xff]   ;;  %v4920_v41 = vld [vmem:[#allocation6 + $0x38c] ss:$28 sps:$4 sm:$0xff]  }
 0x1de   :  { %3442 = vmatprep.subr.bf16.mxu0 %v4845_v43  ;;  %v1890_v43 = vld [vmem:[%s5717_s6] ss:$2 sm:$0xf] }
 0x1e0   :  { %4442 = vmatpush3.bf16.msra.mxu1 %v4441_v54  ;;  %v4858_v54 = vld [vmem:[#allocation6 + $0x158] ss:$28 sps:$4 sm:$0xff]  }
 0x1e1   :  { %4444 = vmatprep.subr.bf16.mxu1 %v4443_v55  ;;  %3443 = vmatpush1.bf16.msra.mxu0 %v4843_v45  ;;  %v4863_v55 = vld [vmem:[#allocation6 + $0x18c] ss:$28 sps:$4 sm:$0xff]   ;;  %v1900_v45 = vrot.slane %v1890_v43, %v5481_v5 }
 0x1e2   :  { %3444 = vmatprep.subr.bf16.mxu0 %v4851_v47  ;;  %v1908_v47 = vrot.slane %v1890_v43, %v5575_v61 }
 0x1e4   :  { %4446 = vmatpush3.bf16.msra.mxu1 %v4445_v60  ;;  %v4872_v60 = vld [vmem:[#allocation6 + $0x1cc] ss:$28 sps:$4 sm:$0xff]  }
 0x1e5   :  { %4448 = vmatprep.subr.bf16.mxu1 %v4447_v62  ;;  %3445 = vmatpush1.bf16.msra.mxu0 %v4849_v49  ;;  %v4867_v62 = vld [vmem:[#allocation6 + $0x1c0] ss:$28 sps:$4 sm:$0xff]  }
 0x1e6   :  { %3446 = vmatprep.subr.bf16.mxu0 %v4857_v51 }
 0x1e8   :  { %4450 = vmatpush3.bf16.msra.mxu1 %v4449_v3  ;;  %v4876_v3 = vld [vmem:[#allocation6 + $0x200] ss:$28 sps:$4 sm:$0xff]  }
 0x1e9   :  { %4452 = vmatprep.subr.bf16.mxu1 %v4451_v10  ;;  %3447 = vmatpush1.bf16.msra.mxu0 %v4855_v53  ;;  %v4884_v10 = vld [vmem:[#allocation6 + $0x23c] ss:$28 sps:$4 sm:$0xff]  }
 0x1ea   :  { %3448 = vmatprep.subr.bf16.mxu0 %v4863_v55 }
 0x1ec   :  { %4454 = vmatpush3.bf16.msra.mxu1 %v4453_v16  ;;  %v4887_v16 = vld [vmem:[#allocation6 + $0x26c] ss:$28 sps:$4 sm:$0xff]  }
 0x1ed   :  { %3516 = vmatprep.subr.bf16.mxu1 %v4824_v29  ;;  %3449 = vmatpush1.bf16.msra.mxu0 %v4861_v57 }
 0x1ee   :  { %3450 = vmatprep.subr.bf16.mxu0 %v4869_v59 }
 0x1ef   :  { %1836 = vmatmul.mubr.f32.vlgmr.msra.gmra.mrb[6].mxu1 %v1628_v18  ;;  %v4885_v18 = vld [vmem:[#allocation6 + $0x268] ss:$28 sps:$4 sm:$0xff]  }
 0x1f0   :  { %3517 = vmatpush1.bf16.msra.mxu1 %v4822_v28 }
 0x1f1   :  { %3518 = vmatprep.subr.bf16.mxu1 %v4830_v31  ;;  %3451 = vmatpush1.bf16.msra.mxu0 %v4867_v62  ;;  %v4908_v31 = vld [vmem:[#allocation6 + $0x31c] ss:$28 sps:$4 sm:$0xff]  }
 0x1f2   :  { %3452 = vmatprep.subr.bf16.mxu0 %v4875_v0 }
 0x1f4   :  { %3519 = vmatpush1.bf16.msra.mxu1 %v4828_v34  ;;  %v4903_v34 = vld [vmem:[#allocation6 + $0x310] ss:$28 sps:$4 sm:$0xff]  }
 0x1f5   :  { %3520 = vmatprep.subr.bf16.mxu1 %v4836_v36  ;;  %3453 = vmatpush1.bf16.msra.mxu0 %v4873_v2  ;;  %v4911_v36 = vld [vmem:[#allocation6 + $0x34c] ss:$28 sps:$4 sm:$0xff]  }
 0x1f6   :  { %3454 = vmatprep.subr.bf16.mxu0 %v4881_v9 }
 0x1f8   :  { %3521 = vmatpush1.bf16.msra.mxu1 %v4834_v38  ;;  %v4909_v38 = vld [vmem:[#allocation6 + $0x348] ss:$28 sps:$4 sm:$0xff]  }
 0x1f9   :  { %3522 = vmatprep.subr.bf16.mxu1 %v4842_v40  ;;  %3455 = vmatpush1.bf16.msra.mxu0 %v4879_v11  ;;  %v4917_v40 = vld [vmem:[#allocation6 + $0x384] ss:$28 sps:$4 sm:$0xff]  }
 0x1fa   :  { %3456 = vmatprep.subr.bf16.mxu0 %v4887_v16 }
 0x1fc   :  { %3523 = vmatpush1.bf16.msra.mxu1 %v4840_v42  ;;  %v4045_v42 = vld [vmem:[%s5717_s6 + $0x1] ss:$2 sm:$0xf] }
 0x1fd   :  { %3524 = vmatprep.subr.bf16.mxu1 %v4848_v44  ;;  %3457 = vmatpush1.bf16.msra.mxu0 %v4885_v18  ;;  %v1889_v44 = vld [vmem:[%s5718_s7] sm:$0xf]  ;;  %v1956_v49 = vrot.slane %v4045_v42, %v5481_v5  ;;  %v1968_v51 = vrot.slane %v4045_v42, %v5492_v8 }
 0x1fe   :  { %v1925_v53 = vrot.slane %v1889_v44, %v5481_v5  ;;  %v1933_v55 = vrot.slane %v1889_v44, %v5575_v61 }
 0x200   :  { %3525 = vmatpush1.bf16.msra.mxu1 %v4846_v46  ;;  %v1904_v46 = vrot.slane %v1890_v43, %v5489_v7 }
 0x201   :  { %3526 = vmatprep.subr.bf16.mxu1 %v4854_v48  ;;  %v1912_v48 = vrot.slane %v1890_v43, %v5492_v8  ;;  %v4939_v43 = vld [vmem:[#allocation6 + $0x460] ss:$28 sps:$4 sm:$0xff]  }
 0x204   :  { %3527 = vmatpush1.bf16.msra.mxu1 %v4852_v50  ;;  %v1960_v50 = vrot.slane %v4045_v42, %v5489_v7 }
 0x205   :  { %3528 = vmatprep.subr.bf16.mxu1 %v4860_v52 }
 0x208   :  { %3529 = vmatpush1.bf16.msra.mxu1 %v4858_v54  ;;  %v1929_v54 = vrot.slane %v1889_v44, %v5489_v7 }
 0x209   :  { %3530 = vmatprep.subr.bf16.mxu1 %v4866_v56  ;;  %v1937_v56 = vrot.slane %v1889_v44, %v5492_v8  ;;  %v4947_v44 = vld [vmem:[#allocation6 + $0x49c] ss:$28 sps:$4 sm:$0xff]  }
 0x20c   :  { %3531 = vmatpush1.bf16.msra.mxu1 %v4864_v58 }
 0x20d   :  { %3532 = vmatprep.subr.bf16.mxu1 %v4872_v60 }
 0x210   :  { %3533 = vmatpush1.bf16.msra.mxu1 %v4870_v63 }
 0x211   :  { %3534 = vmatprep.subr.bf16.mxu1 %v4878_v1 }
 0x214   :  { %3535 = vmatpush1.bf16.msra.mxu1 %v4876_v3 }
 0x215   :  { %3536 = vmatprep.subr.bf16.mxu1 %v4884_v10 }
 0x218   :  { %3537 = vmatpush1.bf16.msra.mxu1 %v4882_v14 }
 0x219   :  { %3538 = vmatprep.subr.bf16.mxu1 %v4890_v17 }
 0x2a2   :  { %v4309_v19 = vpop.f32.mrb[4].mxu1 }
 0x2a3   :  { %v4310_v6 = vpop.f32.mrb[5].mxu1 }
 0x2a4   :  { %v4311_v20 = vadd.f32 %v4310_v6, %v4309_v19  ;;  %v4888_v19 = vld [vmem:[#allocation6 + $0x270] ss:$28 sps:$4 sm:$0xff]   ;;  %v4893_v6 = vld [vmem:[#allocation6 + $0x2a4] ss:$28 sps:$4 sm:$0xff]  }
 0x2a5   :  { %3539 = vmatpush1.bf16.msra.mxu1 %v4888_v19  ;;  %3458 = vmatprep.subr.bf16.mxu0 %v4893_v6 }
 0x2a6   :  { %v1768_v13 = vadd.f32 %v4311_v20, %v4043_v12  ;;  %v4896_v20 = vld [vmem:[#allocation6 + $0x2ac] ss:$28 sps:$4 sm:$0xff]   ;;  %v4891_v12 = vld [vmem:[#allocation6 + $0x2a0] ss:$28 sps:$4 sm:$0xff]  }
 0x2a7   :  { %3540 = vmatprep.subr.bf16.mxu1 %v4896_v20  ;;  %3459 = vmatpush1.bf16.msra.mxu0 %v4891_v12 }
 0x2c2   :  { %v4344_v21 = vpop.f32.mrb[6].mxu1 }
 0x2c3   :  { %v4345_v22 = vpop.f32.mrb[7].mxu1 }
 0x2c4   :  { %v4346_v23 = vadd.f32 %v4345_v22, %v4344_v21  ;;  %v4894_v21 = vld [vmem:[#allocation6 + $0x2a8] ss:$28 sps:$4 sm:$0xff]   ;;  %v4899_v22 = vld [vmem:[#allocation6 + $0x2dc] ss:$28 sps:$4 sm:$0xff]  }
 0x2c5   :  { %3541 = vmatpush1.bf16.msra.mxu1 %v4894_v21  ;;  %3460 = vmatprep.subr.bf16.mxu0 %v4899_v22 }
 0x2c6   :  { %v5601_v24 = vadd.f32 %v4346_v23, %v1768_v13  ;;  %v4902_v13 = vld [vmem:[#allocation6 + $0x2e4] ss:$28 sps:$4 sm:$0xff]   ;;  %v4897_v23 = vld [vmem:[#allocation6 + $0x2d8] ss:$28 sps:$4 sm:$0xff]  }
 0x2c7   :  { %3542 = vmatprep.subr.bf16.mxu1 %v4902_v13  ;;  %3461 = vmatpush1.bf16.msra.mxu0 %v4897_v23 }
 0x2c8   :  { %v1841_v25 = vmul.f32 1.442695, %v5601_v24  ;;  %v1851_v32 = vmul.f32 %v5601_v24, %v5601_v24  ;;  %3462 = vmatprep.subr.bf16.mxu0 %v4905_v30  ;;  %v4921_v30 = vld [vmem:[#allocation6 + $0x3b8] ss:$28 sps:$4 sm:$0xff]  }
 0x2ca   :  { %5139 = vpow2.f32 %v1841_v25  ;;  %v4900_v25 = vld [vmem:[#allocation6 + $0x2e0] ss:$28 sps:$4 sm:$0xff]  }
 0x2cb   :  { %3543 = vmatpush1.bf16.msra.mxu1 %v4900_v25  ;;  %3463 = vmatpush1.bf16.msra.mxu0 %v4903_v34  ;;  %v4932_v34 = vld [vmem:[#allocation6 + $0x3fc] ss:$28 sps:$4 sm:$0xff]  }
 0x2cc   :  { %3544 = vmatprep.subr.bf16.mxu1 %v4908_v31  ;;  %3464 = vmatprep.subr.bf16.mxu0 %v4911_v36  ;;  %v4924_v31 = vld [vmem:[#allocation6 + $0x3c0] ss:$28 sps:$4 sm:$0xff]   ;;  %v4930_v36 = vld [vmem:[#allocation6 + $0x3f8] ss:$28 sps:$4 sm:$0xff]  }
 0x2cf   :  { %3545 = vmatpush1.bf16.msra.mxu1 %v4906_v35  ;;  %3465 = vmatpush1.bf16.msra.mxu0 %v4909_v38  ;;  %v4927_v35 = vld [vmem:[#allocation6 + $0x3f0] ss:$28 sps:$4 sm:$0xff]  }
 0x2d0   :  { %3546 = vmatprep.subr.bf16.mxu1 %v4914_v37  ;;  %3475 = vmatprep.subr.bf16.mxu0 %v4917_v40  ;;  %v4935_v37 = vld [vmem:[#allocation6 + $0x42c] ss:$28 sps:$4 sm:$0xff]   ;;  %v4938_v38 = vld [vmem:[#allocation6 + $0x434] ss:$28 sps:$4 sm:$0xff]  }
 0x2d1   :  { %v4936_v40 = vld [vmem:[#allocation6 + $0x430] ss:$28 sps:$4 sm:$0xff]  }
 0x2d3   :  { %3547 = vmatpush1.bf16.msra.mxu1 %v4912_v39  ;;  %v4933_v39 = vld [vmem:[#allocation6 + $0x428] ss:$28 sps:$4 sm:$0xff]  }
 0x2d4   :  { %v5605_v33 = vpop.eup %5139  ;;  %3557 = vmatprep.subr.bf16.mxu1 %v4920_v41  ;;  %v4941_v41 = vld [vmem:[#allocation6 + $0x464] ss:$28 sps:$4 sm:$0xff]  }
 0x2d5   :  { %1845 = vrot.lane.b32.xlu0 %v5605_v33, %s5261_s4  ;;  %v1850_v3 = vmul.f32 %v5605_v33, %v5605_v33  ;;  %v4915_v33 = vld [vmem:[#allocation6 + $0x380] ss:$28 sps:$4 sm:$0xff]  }
 0x347   :  { %v1846_v27 = vpop.permute.xlu0 %1845 }
 0x348   :  { %v1848_v28 = vmul.f32 %v1846_v27, %v1843_v26  ;;  %v4918_v26 = vld [vmem:[#allocation6 + $0x388] ss:$28 sps:$4 sm:$0xff]  }
 0x34a   :  { %v1849_v29 = vadd.f32 %v1848_v28, %v5601_v24  ;;  %v4923_v28 = vld [vmem:[#allocation6 + $0x3bc] ss:$28 sps:$4 sm:$0xff]  }
 0x34c   :  { %1949 = vperm.xlu1 %4516, %v1849_v29   ;;  %1893 = vperm.xlu0 %4515, %v1849_v29   ;;  %v4926_v29 = vld [vmem:[#allocation6 + $0x3c4] ss:$28 sps:$4 sm:$0xff]  }
 0x350   :  { %1853 = vrot.lane.b32.xlu1 %v1851_v32, %s5262_s0  ;;  %4517 = vset.pattern.permute.xlu0 %v5260_v15  ;;  %v1964_v15 = vrot.slane %v4045_v42, %v5575_v61  ;;  %v4929_v32 = vld [vmem:[#allocation6 + $0x3f4] ss:$28 sps:$4 sm:$0xff]   ;;  %v4944_v42 = vld [vmem:[#allocation6 + $0x46c] ss:$28 sps:$4 sm:$0xff]  }
 0x3cb   :  { %v1950_v52 = vpop.permute.xlu1 %1949  ;;  %v1894_v57 = vpop.permute.xlu0 %1893 }
 0x3cc   :  { %v1975_v58 = vmul.f32 %v1964_v15, %v1950_v52  ;;  %v1917_v59 = vmul.f32 %v1900_v45, %v1894_v57  ;;  %v1918_v60 = vmul.f32 %v1904_v46, %v1894_v57  ;;  %v1919_v62 = vmul.f32 %v1908_v47, %v1894_v57  ;;  %v4942_v15 = vld [vmem:[#allocation6 + $0x468] ss:$28 sps:$4 sm:$0xff]   ;;  %v4945_v46 = vld [vmem:[#allocation6 + $0x498] ss:$28 sps:$4 sm:$0xff]   ;;  %v4948_v47 = vld [vmem:[#allocation6 + $0x4a0] ss:$28 sps:$4 sm:$0xff]  }
 0x3cd   :  { %v1920_v63 = vmul.f32 %v1912_v48, %v1894_v57  ;;  %v1973_v0 = vmul.f32 %v1956_v49, %v1950_v52  ;;  %v1974_v1 = vmul.f32 %v1960_v50, %v1950_v52  ;;  %v1976_v2 = vmul.f32 %v1968_v51, %v1950_v52  ;;  %v4950_v45 = vld [vmem:[#allocation6 + $0x4a4] ss:$28 sps:$4 sm:$0xff]   ;;  %v4953_v48 = vld [vmem:[#allocation6 + $0x4d4] ss:$28 sps:$4 sm:$0xff]   ;;  %v4956_v49 = vld [vmem:[#allocation6 + $0x4dc] ss:$28 sps:$4 sm:$0xff]  }
 0x3ce   :  { %v1942_v9 = vadd.f32 %v1925_v53, %v1917_v59  ;;  %v1943_v10 = vadd.f32 %v1929_v54, %v1918_v60  ;;  %v1944_v11 = vadd.f32 %v1933_v55, %v1919_v62  ;;  %v4951_v50 = vld [vmem:[#allocation6 + $0x4d0] ss:$28 sps:$4 sm:$0xff]   ;;  %v4954_v51 = vld [vmem:[#allocation6 + $0x4d8] ss:$28 sps:$4 sm:$0xff]   ;;  %v4957_v54 = vld [vmem:[#allocation6 + $0x508] ss:$28 sps:$4 sm:$0xff]  }
 0x3cf   :  { %v1945_v14 = vadd.f32 %v1937_v56, %v1920_v63  ;;  %v1854_v16 = vpop.permute.xlu1 %1853  ;;  %v4959_v52 = vld [vmem:[#allocation6 + $0x50c] ss:$28 sps:$4 sm:$0xff]   ;;  %v4962_v53 = vld [vmem:[#allocation6 + $0x514] ss:$28 sps:$4 sm:$0xff]   ;;  %v4965_v56 = vld [vmem:[#allocation6 + $0x544] ss:$28 sps:$4 sm:$0xff]  }
 0x3d0   :  { %v1856_v17 = vadd.f32 %v1854_v16, %v1850_v3  ;;  %v1978_v18 = vadd.f32 %v1974_v1, %v1943_v10  ;;  %v1977_v19 = vadd.f32 %v1973_v0, %v1942_v9  ;;  %v5639_v20 = vadd.f32 %v1975_v58, %v1944_v11  ;;  %v4960_v55 = vld [vmem:[#allocation6 + $0x510] ss:$28 sps:$4 sm:$0xff]   ;;  %v4963_v58 = vld [vmem:[#allocation6 + $0x540] ss:$28 sps:$4 sm:$0xff]   ;;  %v4966_v59 = vld [vmem:[#allocation6 + $0x548] ss:$28 sps:$4 sm:$0xff]  }
 0x3d1   :  { %v1980_v6 = vadd.f32 %v1976_v2, %v1945_v14  ;;  %v4968_v57 = vld [vmem:[#allocation6 + $0x54c] ss:$28 sps:$4 sm:$0xff]   ;;  %v4971_v60 = vld [vmem:[#allocation6 + $0x57c] ss:$28 sps:$4 sm:$0xff]   ;;  %v4974_v62 = vld [vmem:[#allocation6 + $0x584] ss:$28 sps:$4 sm:$0xff]  }
 0x3d2   :  { %v1857_v12 = vsub.f32 %v1856_v17, %v5601_v24  ;;  %v1982_v21 = vmax.f32 %v1978_v18, 0.0  ;;  %v1981_v22 = vmax.f32 %v1977_v19, 0.0  ;;  %v4969_v63 = vld [vmem:[#allocation6 + $0x578] ss:$28 sps:$4 sm:$0xff]   ;;  %v4972_v0 = vld [vmem:[#allocation6 + $0x580] ss:$28 sps:$4 sm:$0xff]  }
 0x3d3   :  { %v1984_v23 = vmax.f32 %v1980_v6, 0.0  ;;  %v4977_v1 = vld [vmem:[#allocation6 + $0x5b4] ss:$28 sps:$4 sm:$0xff]   ;;  %v4980_v2 = vld [vmem:[#allocation6 + $0x5bc] ss:$28 sps:$4 sm:$0xff]  }
 0x3d4   :  { %v4044_v13 = vadd.f32 -0.5, %v1857_v12  ;;  %v5642_v25 = vpack.c.bf16 %v1982_v21, %v1982_v21  ;;  %v5644_v27 = vpack.c.bf16 %v1981_v22, %v1981_v22  ;;  %v4975_v3 = vld [vmem:[#allocation6 + $0x5b0] ss:$28 sps:$4 sm:$0xff]   ;;  %v4978_v9 = vld [vmem:[#allocation6 + $0x5b8] ss:$28 sps:$4 sm:$0xff]  }
 0x3d5   :  { %v5651_v24 = vpack.c.bf16 %v1984_v23, %v1984_v23  ;;  %v4983_v10 = vld [vmem:[#allocation6 + $0x5ec] ss:$28 sps:$4 sm:$0xff]   ;;  %v4986_v11 = vld [vmem:[#allocation6 + $0x5f4] ss:$28 sps:$4 sm:$0xff]   ;;  %v4989_v17 = vld [vmem:[#allocation6 + $0x624] ss:$28 sps:$4 sm:$0xff]  }
 0x3d6   :  { %1868 = vrot.lane.b32.xlu1 %v4044_v13, %s5261_s4  ;;  %3466 = vmatprep.mubr.bf16.mxu0 %v5642_v25  ;;  %v4981_v14 = vld [vmem:[#allocation6 + $0x5e8] ss:$28 sps:$4 sm:$0xff]   ;;  %v4984_v16 = vld [vmem:[#allocation6 + $0x5f0] ss:$28 sps:$4 sm:$0xff]   ;;  %v4987_v19 = vld [vmem:[#allocation6 + $0x620] ss:$28 sps:$4 sm:$0xff]  }
 0x3d7   :  { %3548 = vmatprep.mubr.bf16.mxu1 %v5642_v25  ;;  %3467 = vmatmul.mubr.bf16.vlgmr.msra.gmra.mrb[4].mxu0 %v5644_v27  ;;  %v4992_v18 = vld [vmem:[#allocation6 + $0x62c] ss:$28 sps:$4 sm:$0xff]   ;;  %v4995_v12 = vld [vmem:[#allocation6 + $0x65c] ss:$28 sps:$4 sm:$0xff]   ;;  %v4998_v21 = vld [vmem:[#allocation6 + $0x664] ss:$28 sps:$4 sm:$0xff]  }
 0x3d8   :  { %3549 = vmatmul.mubr.bf16.vlgmr.msra.gmra.mrb[8].mxu1 %v5644_v27  ;;  %3476 = vmatpush1.bf16.msra.mxu0 %v4915_v33  ;;  %v4990_v6 = vld [vmem:[#allocation6 + $0x628] ss:$28 sps:$4 sm:$0xff]   ;;  %v4993_v22 = vld [vmem:[#allocation6 + $0x658] ss:$28 sps:$4 sm:$0xff]   ;;  %v4996_v13 = vld [vmem:[#allocation6 + $0x660] ss:$28 sps:$4 sm:$0xff]  }
 0x3d9   :  { %3558 = vmatpush1.bf16.msra.mxu1 %v4918_v26  ;;  %3507 = vmatprep.mubr.bf16.mxu0 %v5651_v24  ;;  %v5001_v23 = vld [vmem:[#allocation6 + $0x694] ss:$28 sps:$4 sm:$0xff]   ;;  %v5004_v33 = vld [vmem:[#allocation6 + $0x69c] ss:$28 sps:$4 sm:$0xff]  }
 0x3da   :  { %3589 = vmatprep.mubr.bf16.mxu1 %v5651_v24  ;;  %3477 = vmatprep.subr.bf16.mxu0 %v4923_v28  ;;  %v4999_v26 = vld [vmem:[#allocation6 + $0x690] ss:$28 sps:$4 sm:$0xff]   ;;  %v5002_v28 = vld [vmem:[#allocation6 + $0x698] ss:$28 sps:$4 sm:$0xff]  }
 0x3db   :  { %3559 = vmatprep.subr.bf16.mxu1 %v4926_v29  ;;  %v5007_v29 = vld [vmem:[#allocation6 + $0x6cc] ss:$28 sps:$4 sm:$0xff]  }
 0x3dc   :  { %3478 = vmatpush1.bf16.msra.mxu0 %v4921_v30  ;;  %v5010_v30 = vld [vmem:[#allocation6 + $0x6d4] ss:$28 sps:$4 sm:$0xff]  }
 0x3dd   :  { %3560 = vmatpush1.bf16.msra.mxu1 %v4924_v31  ;;  %3479 = vmatprep.subr.bf16.mxu0 %v4929_v32  ;;  %v5005_v31 = vld [vmem:[#allocation6 + $0x6c8] ss:$28 sps:$4 sm:$0xff]   ;;  %v5008_v32 = vld [vmem:[#allocation6 + $0x6d0] ss:$28 sps:$4 sm:$0xff]  }
 0x3de   :  { %3561 = vmatprep.subr.bf16.mxu1 %v4932_v34  ;;  %v1983_v34 = vmax.f32 %v5639_v20, 0.0  ;;  %v5016_v20 = vld [vmem:[#allocation6 + $0x48] ss:$28 sps:$4 sm:$0xff]  }
 0x3e0   :  { %3480 = vmatpush1.bf16.msra.mxu0 %v4927_v35  ;;  %v5013_v35 = vld [vmem:[#allocation6 + $0x14] ss:$28 sps:$4 sm:$0xff]  }
 0x3e1   :  { %3562 = vmatpush1.bf16.msra.mxu1 %v4930_v36  ;;  %3481 = vmatprep.subr.bf16.mxu0 %v4935_v37  ;;  %v5014_v36 = vld [vmem:[#allocation6 + $0x1d8] ss:$28 sps:$4 sm:$0xff]   ;;  %v5011_v37 = vld [vmem:[#allocation6 + $0x10] ss:$28 sps:$4 sm:$0xff]  }
 0x3e2   :  { %3563 = vmatprep.subr.bf16.mxu1 %v4938_v38  ;;  %v5656_v38 = vpack.c.bf16 %v1983_v34, %v1983_v34  ;;  %v5076_v34 = vld [vmem:[#allocation6 + $0x2e8] ss:$28 sps:$4 sm:$0xff]  }
 0x3e4   :  { %3482 = vmatpush1.bf16.msra.mxu0 %v4933_v39  ;;  %v5015_v39 = vld [vmem:[#allocation6 + $0x18] ss:$28 sps:$4 sm:$0xff]  }
 0x3e5   :  { %3564 = vmatpush1.bf16.msra.mxu1 %v4936_v40  ;;  %3483 = vmatprep.subr.bf16.mxu0 %v4941_v41  ;;  %v5018_v40 = vld [vmem:[#allocation6 + $0x4c] ss:$28 sps:$4 sm:$0xff]  }
 0x3e6   :  { %3565 = vmatprep.subr.bf16.mxu1 %v4944_v42  ;;  %v5019_v41 = vld [vmem:[#allocation6 + $0x210] ss:$28 sps:$4 sm:$0xff]  }
 0x3e7   :  { %v5020_v42 = vld [vmem:[#allocation6 + $0x50] ss:$28 sps:$4 sm:$0xff]  }
 0x3e8   :  { %3484 = vmatpush1.bf16.msra.mxu0 %v4939_v43  ;;  %v5023_v43 = vld [vmem:[#allocation6 + $0x84] ss:$28 sps:$4 sm:$0xff]  }
 0x3e9   :  { %3566 = vmatpush1.bf16.msra.mxu1 %v4942_v15  ;;  %3485 = vmatprep.subr.bf16.mxu0 %v4947_v44  ;;  %v5024_v15 = vld [vmem:[#allocation6 + $0x248] ss:$28 sps:$4 sm:$0xff]   ;;  %v5021_v44 = vld [vmem:[#allocation6 + $0x80] ss:$28 sps:$4 sm:$0xff]  }
 0x3ea   :  { %3567 = vmatprep.subr.bf16.mxu1 %v4950_v45  ;;  %v5025_v45 = vld [vmem:[#allocation6 + $0x88] ss:$28 sps:$4 sm:$0xff]  }
 0x3ec   :  { %3486 = vmatpush1.bf16.msra.mxu0 %v4945_v46  ;;  %v5028_v46 = vld [vmem:[#allocation6 + $0xbc] ss:$28 sps:$4 sm:$0xff]  }
 0x3ed   :  { %3568 = vmatpush1.bf16.msra.mxu1 %v4948_v47  ;;  %3487 = vmatprep.subr.bf16.mxu0 %v4953_v48  ;;  %v5029_v47 = vld [vmem:[#allocation6 + $0x280] ss:$28 sps:$4 sm:$0xff]   ;;  %v5026_v48 = vld [vmem:[#allocation6 + $0xb8] ss:$28 sps:$4 sm:$0xff]  }
 0x3ee   :  { %3569 = vmatprep.subr.bf16.mxu1 %v4956_v49  ;;  %v5030_v49 = vld [vmem:[#allocation6 + $0xc0] ss:$28 sps:$4 sm:$0xff]  }
 0x3f0   :  { %3488 = vmatpush1.bf16.msra.mxu0 %v4951_v50  ;;  %v5033_v50 = vld [vmem:[#allocation6 + $0xf4] ss:$28 sps:$4 sm:$0xff]  }
 0x3f1   :  { %3570 = vmatpush1.bf16.msra.mxu1 %v4954_v51  ;;  %3489 = vmatprep.subr.bf16.mxu0 %v4959_v52  ;;  %v5031_v51 = vld [vmem:[#allocation6 + $0xf0] ss:$28 sps:$4 sm:$0xff]   ;;  %v5035_v52 = vld [vmem:[#allocation6 + $0xf8] ss:$28 sps:$4 sm:$0xff]  }
 0x3f2   :  { %3571 = vmatprep.subr.bf16.mxu1 %v4962_v53  ;;  %v5038_v53 = vld [vmem:[#allocation6 + $0x12c] ss:$28 sps:$4 sm:$0xff]  }
 0x3f4   :  { %3490 = vmatpush1.bf16.msra.mxu0 %v4957_v54  ;;  %v5039_v54 = vld [vmem:[#allocation6 + $0x2f0] ss:$28 sps:$4 sm:$0xff]  }
 0x3f5   :  { %3572 = vmatpush1.bf16.msra.mxu1 %v4960_v55  ;;  %3491 = vmatprep.subr.bf16.mxu0 %v4965_v56  ;;  %v5036_v55 = vld [vmem:[#allocation6 + $0x128] ss:$28 sps:$4 sm:$0xff]   ;;  %v5040_v56 = vld [vmem:[#allocation6 + $0x130] ss:$28 sps:$4 sm:$0xff]  }
 0x3f6   :  { %3573 = vmatprep.subr.bf16.mxu1 %v4968_v57  ;;  %v5043_v57 = vld [vmem:[#allocation6 + $0x164] ss:$28 sps:$4 sm:$0xff]  }
 0x3f8   :  { %3492 = vmatpush1.bf16.msra.mxu0 %v4963_v58  ;;  %v5044_v58 = vld [vmem:[#allocation6 + $0x328] ss:$28 sps:$4 sm:$0xff]  }
 0x3f9   :  { %3574 = vmatpush1.bf16.msra.mxu1 %v4966_v59  ;;  %3493 = vmatprep.subr.bf16.mxu0 %v4971_v60  ;;  %v5041_v59 = vld [vmem:[#allocation6 + $0x160] ss:$28 sps:$4 sm:$0xff]   ;;  %v5045_v60 = vld [vmem:[#allocation6 + $0x168] ss:$28 sps:$4 sm:$0xff]  }
 0x3fa   :  { %3575 = vmatprep.subr.bf16.mxu1 %v4974_v62  ;;  %v5048_v62 = vld [vmem:[#allocation6 + $0x19c] ss:$28 sps:$4 sm:$0xff]  }
 0x3fc   :  { %3494 = vmatpush1.bf16.msra.mxu0 %v4969_v63  ;;  %v5049_v63 = vld [vmem:[#allocation6 + $0x360] ss:$28 sps:$4 sm:$0xff]  }
 0x3fd   :  { %3576 = vmatpush1.bf16.msra.mxu1 %v4972_v0  ;;  %3495 = vmatprep.subr.bf16.mxu0 %v4977_v1  ;;  %v5046_v0 = vld [vmem:[#allocation6 + $0x198] ss:$28 sps:$4 sm:$0xff]   ;;  %v5050_v1 = vld [vmem:[#allocation6 + $0x1a0] ss:$28 sps:$4 sm:$0xff]  }
 0x3fe   :  { %3577 = vmatprep.subr.bf16.mxu1 %v4980_v2  ;;  %v5053_v2 = vld [vmem:[#allocation6 + $0x1d4] ss:$28 sps:$4 sm:$0xff]  }
 0x400   :  { %3496 = vmatpush1.bf16.msra.mxu0 %v4975_v3  ;;  %v5054_v3 = vld [vmem:[#allocation6 + $0x558] ss:$28 sps:$4 sm:$0xff]  }
 0x401   :  { %3578 = vmatpush1.bf16.msra.mxu1 %v4978_v9  ;;  %3497 = vmatprep.subr.bf16.mxu0 %v4983_v10  ;;  %v5051_v9 = vld [vmem:[#allocation6 + $0x1d0] ss:$28 sps:$4 sm:$0xff]   ;;  %v5055_v10 = vld [vmem:[#allocation6 + $0x398] ss:$28 sps:$4 sm:$0xff]  }
 0x402   :  { %3579 = vmatprep.subr.bf16.mxu1 %v4986_v11  ;;  %v5058_v11 = vld [vmem:[#allocation6 + $0x20c] ss:$28 sps:$4 sm:$0xff]  }
 0x404   :  { %3498 = vmatpush1.bf16.msra.mxu0 %v4981_v14  ;;  %v5059_v14 = vld [vmem:[#allocation6 + $0x590] ss:$28 sps:$4 sm:$0xff]  }
 0x405   :  { %3580 = vmatpush1.bf16.msra.mxu1 %v4984_v16  ;;  %3499 = vmatprep.subr.bf16.mxu0 %v4989_v17  ;;  %v5056_v16 = vld [vmem:[#allocation6 + $0x208] ss:$28 sps:$4 sm:$0xff]   ;;  %v5060_v17 = vld [vmem:[#allocation6 + $0x3d0] ss:$28 sps:$4 sm:$0xff]  }
 0x406   :  { %3581 = vmatprep.subr.bf16.mxu1 %v4992_v18  ;;  %v5063_v18 = vld [vmem:[#allocation6 + $0x244] ss:$28 sps:$4 sm:$0xff]  }
 0x408   :  { %3500 = vmatpush1.bf16.msra.mxu0 %v4987_v19  ;;  %v5064_v19 = vld [vmem:[#allocation6 + $0x5c8] ss:$28 sps:$4 sm:$0xff]  }
 0x409   :  { %3582 = vmatpush1.bf16.msra.mxu1 %v4990_v6  ;;  %3501 = vmatprep.subr.bf16.mxu0 %v4995_v12  ;;  %v5061_v6 = vld [vmem:[#allocation6 + $0x240] ss:$28 sps:$4 sm:$0xff]   ;;  %v5065_v12 = vld [vmem:[#allocation6 + $0x408] ss:$28 sps:$4 sm:$0xff]  }
 0x40a   :  { %3583 = vmatprep.subr.bf16.mxu1 %v4998_v21  ;;  %v5068_v21 = vld [vmem:[#allocation6 + $0x27c] ss:$28 sps:$4 sm:$0xff]  }
 0x40c   :  { %3502 = vmatpush1.bf16.msra.mxu0 %v4993_v22  ;;  %v5069_v22 = vld [vmem:[#allocation6 + $0x600] ss:$28 sps:$4 sm:$0xff]  }
 0x40d   :  { %3584 = vmatpush1.bf16.msra.mxu1 %v4996_v13  ;;  %3503 = vmatprep.subr.bf16.mxu0 %v5001_v23  ;;  %v5066_v13 = vld [vmem:[#allocation6 + $0x278] ss:$28 sps:$4 sm:$0xff]   ;;  %v5070_v23 = vld [vmem:[#allocation6 + $0x440] ss:$28 sps:$4 sm:$0xff]  }
 0x40e   :  { %3585 = vmatprep.subr.bf16.mxu1 %v5004_v33  ;;  %v5073_v33 = vld [vmem:[#allocation6 + $0x2b4] ss:$28 sps:$4 sm:$0xff]  }
 0x410   :  { %3504 = vmatpush1.bf16.msra.mxu0 %v4999_v26  ;;  %v5074_v26 = vld [vmem:[#allocation6 + $0x638] ss:$28 sps:$4 sm:$0xff]  }
 0x411   :  { %3586 = vmatpush1.bf16.msra.mxu1 %v5002_v28  ;;  %3505 = vmatprep.subr.bf16.mxu0 %v5007_v29  ;;  %v5071_v28 = vld [vmem:[#allocation6 + $0x2b0] ss:$28 sps:$4 sm:$0xff]   ;;  %v5075_v29 = vld [vmem:[#allocation6 + $0x478] ss:$28 sps:$4 sm:$0xff]  }
 0x412   :  { %3587 = vmatprep.subr.bf16.mxu1 %v5010_v30  ;;  %v5078_v30 = vld [vmem:[#allocation6 + $0x2ec] ss:$28 sps:$4 sm:$0xff]  }
 0x414   :  { %3506 = vmatpush1.bf16.msra.mxu0 %v5005_v31  ;;  %v5079_v31 = vld [vmem:[#allocation6 + $0x670] ss:$28 sps:$4 sm:$0xff]  }
 0x415   :  { %3588 = vmatpush1.bf16.msra.mxu1 %v5008_v32  ;;  %3598 = vmatprep.subr.bf16.mxu0 %v5013_v35 }
 0x416   :  { %4347 = vmatprep.subr.bf16.mxu1 %v5014_v36  ;;  %v5080_v36 = vld [vmem:[#allocation6 + $0x4b0] ss:$28 sps:$4 sm:$0xff]  }
 0x417   :  { %3508 = vmatmul.mubr.bf16.vlgmr.msra.gmra.mrb[4].mxu0 %v5656_v38 }
 0x418   :  { %3590 = vmatmul.mubr.bf16.vlgmr.msra.gmra.mrb[8].mxu1 %v5656_v38  ;;  %3599 = vmatpush1.bf16.msra.mxu0 %v5011_v37  ;;  %v5083_v37 = vld [vmem:[#allocation6 + $0x324] ss:$28 sps:$4 sm:$0xff]  }
 0x419   :  { %3630 = vmatprep.mubr.bf16.mxu0 %v5642_v25  ;;  %4348 = vmatpush3.bf16.msra.mxu1 %v5015_v39  ;;  %v5084_v39 = vld [vmem:[#allocation6 + $0x6a8] ss:$28 sps:$4 sm:$0xff]  }
 0x41a   :  { %3712 = vmatprep.mubr.bf16.mxu1 %v5642_v25  ;;  %3600 = vmatprep.subr.bf16.mxu0 %v5018_v40  ;;  %v5034_v25 = vld [vmem:[#allocation6 + $0x2b8] ss:$28 sps:$4 sm:$0xff]   ;;  %v5081_v40 = vld [vmem:[#allocation6 + $0x320] ss:$28 sps:$4 sm:$0xff]  }
 0x41b   :  { %4349 = vmatprep.subr.bf16.mxu1 %v5019_v41  ;;  %v5085_v41 = vld [vmem:[#allocation6 + $0x4e8] ss:$28 sps:$4 sm:$0xff]  }
 0x41c   :  { %3601 = vmatpush1.bf16.msra.mxu0 %v5016_v20  ;;  %v5088_v20 = vld [vmem:[#allocation6 + $0x35c] ss:$28 sps:$4 sm:$0xff]  }
 0x41d   :  { %4350 = vmatpush3.bf16.msra.mxu1 %v5020_v42  ;;  %3602 = vmatprep.subr.bf16.mxu0 %v5023_v43  ;;  %v5089_v42 = vld [vmem:[#allocation6 + $0x6e0] ss:$28 sps:$4 sm:$0xff]   ;;  %v5086_v43 = vld [vmem:[#allocation6 + $0x358] ss:$28 sps:$4 sm:$0xff]  }
 0x41e   :  { %4351 = vmatprep.subr.bf16.mxu1 %v5024_v15  ;;  %v5090_v15 = vld [vmem:[#allocation6 + $0x520] ss:$28 sps:$4 sm:$0xff]  }
 0x420   :  { %3603 = vmatpush1.bf16.msra.mxu0 %v5021_v44  ;;  %v5093_v44 = vld [vmem:[#allocation6 + $0x394] ss:$28 sps:$4 sm:$0xff]  }
 0x421   :  { %4352 = vmatpush3.bf16.msra.mxu1 %v5025_v45  ;;  %3604 = vmatprep.subr.bf16.mxu0 %v5028_v46  ;;  %v5091_v45 = vld [vmem:[#allocation6 + $0x390] ss:$28 sps:$4 sm:$0xff]  }
 0x422   :  { %4353 = vmatprep.subr.bf16.mxu1 %v5029_v47  ;;  %v5096_v46 = vld [vmem:[#allocation6 + $0x3cc] ss:$28 sps:$4 sm:$0xff]  }
 0x423   :  { %v5094_v47 = vld [vmem:[#allocation6 + $0x3c8] ss:$28 sps:$4 sm:$0xff]  }
 0x424   :  { %3605 = vmatpush1.bf16.msra.mxu0 %v5026_v48  ;;  %v5099_v48 = vld [vmem:[#allocation6 + $0x404] ss:$28 sps:$4 sm:$0xff]  }
 0x425   :  { %4354 = vmatpush3.bf16.msra.mxu1 %v5030_v49  ;;  %3606 = vmatprep.subr.bf16.mxu0 %v5033_v50  ;;  %v5097_v49 = vld [vmem:[#allocation6 + $0x400] ss:$28 sps:$4 sm:$0xff]  }
 0x426   :  { %4355 = vmatprep.subr.bf16.mxu1 %v5034_v25  ;;  %v5102_v50 = vld [vmem:[#allocation6 + $0x43c] ss:$28 sps:$4 sm:$0xff]  }
 0x427   :  { %v5100_v25 = vld [vmem:[#allocation6 + $0x438] ss:$28 sps:$4 sm:$0xff]  }
 0x428   :  { %3607 = vmatpush1.bf16.msra.mxu0 %v5031_v51  ;;  %v5105_v51 = vld [vmem:[#allocation6 + $0x474] ss:$28 sps:$4 sm:$0xff]  }
 0x429   :  { %4356 = vmatpush3.bf16.msra.mxu1 %v5035_v52  ;;  %3608 = vmatprep.subr.bf16.mxu0 %v5038_v53  ;;  %v5103_v52 = vld [vmem:[#allocation6 + $0x470] ss:$28 sps:$4 sm:$0xff]   ;;  %v5106_v53 = vld [vmem:[#allocation6 + $0x4a8] ss:$28 sps:$4 sm:$0xff]  }
 0x42a   :  { %4357 = vmatprep.subr.bf16.mxu1 %v5039_v54  ;;  %v5111_v54 = vld [vmem:[#allocation6 + $0x4e4] ss:$28 sps:$4 sm:$0xff]  }
 0x42c   :  { %3609 = vmatpush1.bf16.msra.mxu0 %v5036_v55  ;;  %v5114_v55 = vld [vmem:[#allocation6 + $0x51c] ss:$28 sps:$4 sm:$0xff]  }
 0x42d   :  { %4358 = vmatpush3.bf16.msra.mxu1 %v5040_v56  ;;  %3610 = vmatprep.subr.bf16.mxu0 %v5043_v57  ;;  %v5112_v56 = vld [vmem:[#allocation6 + $0x518] ss:$28 sps:$4 sm:$0xff]  }
 0x42e   :  { %4359 = vmatprep.subr.bf16.mxu1 %v5044_v58  ;;  %v5117_v57 = vld [vmem:[#allocation6 + $0x554] ss:$28 sps:$4 sm:$0xff]  }
 0x42f   :  { %v5115_v58 = vld [vmem:[#allocation6 + $0x550] ss:$28 sps:$4 sm:$0xff]  }
 0x430   :  { %3611 = vmatpush1.bf16.msra.mxu0 %v5041_v59  ;;  %v5120_v59 = vld [vmem:[#allocation6 + $0x58c] ss:$28 sps:$4 sm:$0xff]  }
 0x431   :  { %4360 = vmatpush3.bf16.msra.mxu1 %v5045_v60  ;;  %3612 = vmatprep.subr.bf16.mxu0 %v5048_v62  ;;  %v5118_v60 = vld [vmem:[#allocation6 + $0x588] ss:$28 sps:$4 sm:$0xff]  }
 0x432   :  { %4361 = vmatprep.subr.bf16.mxu1 %v5049_v63  ;;  %v5123_v62 = vld [vmem:[#allocation6 + $0x5c4] ss:$28 sps:$4 sm:$0xff]  }
 0x433   :  { %v5121_v63 = vld [vmem:[#allocation6 + $0x5c0] ss:$28 sps:$4 sm:$0xff]  }
 0x434   :  { %3613 = vmatpush1.bf16.msra.mxu0 %v5046_v0  ;;  %v5126_v0 = vld [vmem:[#allocation6 + $0x5fc] ss:$28 sps:$4 sm:$0xff]  }
 0x435   :  { %4362 = vmatpush3.bf16.msra.mxu1 %v5050_v1  ;;  %3614 = vmatprep.subr.bf16.mxu0 %v5053_v2  ;;  %v5124_v1 = vld [vmem:[#allocation6 + $0x5f8] ss:$28 sps:$4 sm:$0xff]  }
 0x436   :  { %4369 = vmatprep.subr.bf16.mxu1 %v5054_v3  ;;  %v5129_v2 = vld [vmem:[#allocation6 + $0x634] ss:$28 sps:$4 sm:$0xff]  }
 0x437   :  { %v5127_v3 = vld [vmem:[#allocation6 + $0x630] ss:$28 sps:$4 sm:$0xff]  }
 0x438   :  { %3713 = vmatmul.mubr.bf16.vlgmr.msra.gmra.mrb[12].mxu1 %v5644_v27  ;;  %3615 = vmatpush1.bf16.msra.mxu0 %v5051_v9  ;;  %v5132_v9 = vld [vmem:[#allocation6 + $0x66c] ss:$28 sps:$4 sm:$0xff]  }
 0x439   :  { %4370 = vmatpush3.bf16.msra.mxu1 %v5055_v10  ;;  %3752 = vmatprep.mubr.bf16.mxu1 %v5651_v24  ;;  %v5130_v10 = vld [vmem:[#allocation6 + $0x668] ss:$28 sps:$4 sm:$0xff]  }
 0x43a   :  { %3616 = vmatprep.subr.bf16.mxu0 %v5058_v11  ;;  %4371 = vmatprep.subr.bf16.mxu1 %v5059_v14  ;;  %v5135_v11 = vld [vmem:[#allocation6 + $0x6a4] ss:$28 sps:$4 sm:$0xff]  }
 0x43b   :  { %v5133_v14 = vld [vmem:[#allocation6 + $0x6a0] ss:$28 sps:$4 sm:$0xff]  }
 0x43c   :  { %3617 = vmatpush1.bf16.msra.mxu0 %v5056_v16  ;;  %v5138_v16 = vld [vmem:[#allocation6 + $0x6dc] ss:$28 sps:$4 sm:$0xff]  }
 0x43d   :  { %4372 = vmatpush3.bf16.msra.mxu1 %v5060_v17  ;;  %3618 = vmatprep.subr.bf16.mxu0 %v5063_v18  ;;  %v5136_v17 = vld [vmem:[#allocation6 + $0x6d8] ss:$28 sps:$4 sm:$0xff]  }
 0x43e   :  { %4373 = vmatprep.subr.bf16.mxu1 %v5064_v19 }
 0x440   :  { %3619 = vmatpush1.bf16.msra.mxu0 %v5061_v6  ;;  %v5671_v6 = vld [vmem:[%s5720_s9] sm:$0xff]  ;;  %s5263_s9 = smov [#allocation8]  }
 0x441   :  { %4374 = vmatpush3.bf16.msra.mxu1 %v5065_v12  ;;  %3620 = vmatprep.subr.bf16.mxu0 %v5068_v21  ;;  %v2250_v12 = vrot.slane %v5671_v6, %v5481_v5  ;;  %v2258_v21 = vrot.slane %v5671_v6, %v5575_v61  ;;  %s3815_s3 = sshll.u32 %s5263_s9, 4  ;;  %s3816_s3 = int_to_ptr.vmem [resolvable:$true] %s3815_s3 }
 0x442   :  { %4375 = vmatprep.subr.bf16.mxu1 %v5069_v22  ;;  %v2254_v22 = vrot.slane %v5671_v6, %v5489_v7  ;;  %s5213_s17 = scalar_lea.vmem %s3816_s3, 896  ;;  %p5218_p3 = scmp.lt.s32.totalorder %s3816_s3, %s3816_s3 }
 0x443   :  { %p5214_p2 = scmp.ne.s32.totalorder %s3816_s3, %s5213_s17  ;;  %p5219_p4 = scmp.lt.s32.totalorder %s5213_s17, %s5213_s17 }
 0x444   :  { %3621 = vmatpush1.bf16.msra.mxu0 %v5066_v13 }
 0x445   :  { %4376 = vmatpush3.bf16.msra.mxu1 %v5070_v23  ;;  %3622 = vmatprep.subr.bf16.mxu0 %v5073_v33  ;;  %p5220_p5 = por %p5219_p4, %p5218_p3 }
 0x446   :  { %4377 = vmatprep.subr.bf16.mxu1 %v5074_v26 }
 0x447   :  { %p5221_p6 = pnand %p5220_p5, %p5214_p2 }
 0x448   :  { %v1869_v32 = vpop.permute.xlu1 %1868  ;;  %3623 = vmatpush1.bf16.msra.mxu0 %v5071_v28 }
 0x449   :  { %v1872_v35 = vsel %vm1871_vm1, %v1869_v32, 0.0  ;;  %4378 = vmatpush3.bf16.msra.mxu1 %v5075_v29  ;;  %3624 = vmatprep.subr.bf16.mxu0 %v5078_v30 }
 0x44a   :  { %4379 = vmatprep.subr.bf16.mxu1 %v5079_v31  ;;  %1873 = vadd.xlane.f32.xlu0 %v1872_v35 }
 0x44c   :  { %3625 = vmatpush1.bf16.msra.mxu0 %v5076_v34 }
 0x44d   :  { %4380 = vmatpush3.bf16.msra.mxu1 %v5080_v36  ;;  %3626 = vmatprep.subr.bf16.mxu0 %v5083_v37 }
 0x44e   :  { %4381 = vmatprep.subr.bf16.mxu1 %v5084_v39 }
 0x450   :  { %3627 = vmatpush1.bf16.msra.mxu0 %v5081_v40 }
 0x451   :  { %4382 = vmatpush3.bf16.msra.mxu1 %v5085_v41  ;;  %3628 = vmatprep.subr.bf16.mxu0 %v5088_v20 }
 0x452   :  { %4383 = vmatprep.subr.bf16.mxu1 %v5089_v42 }
 0x454   :  { %3629 = vmatpush1.bf16.msra.mxu0 %v5086_v43 }
 0x455   :  { %4384 = vmatpush3.bf16.msra.mxu1 %v5090_v15  ;;  %3639 = vmatprep.subr.bf16.mxu0 %v5093_v44 }
 0x457   :  { %3631 = vmatmul.mubr.bf16.vlgmr.msra.gmra.mrb[8].mxu0 %v5644_v27  ;;  %v5108_v27 = vld [vmem:[#allocation6 + $0x4ac] ss:$28 sps:$4 sm:$0xff]  }
 0x458   :  { %3753 = vmatmul.mubr.bf16.vlgmr.msra.gmra.mrb[16].mxu1 %v5656_v38  ;;  %3640 = vmatpush1.bf16.msra.mxu0 %v5091_v45 }
 0x459   :  { %3671 = vmatprep.mubr.bf16.mxu0 %v5651_v24  ;;  %3641 = vmatprep.subr.bf16.mxu0 %v5096_v46  ;;  %v5109_v24 = vld [vmem:[#allocation6 + $0x4e0] ss:$28 sps:$4 sm:$0xff]  }
 0x45c   :  { %3642 = vmatpush1.bf16.msra.mxu0 %v5094_v47 }
 0x45d   :  { %3643 = vmatprep.subr.bf16.mxu0 %v5099_v48 }
 0x460   :  { %3644 = vmatpush1.bf16.msra.mxu0 %v5097_v49 }
 0x461   :  { %3645 = vmatprep.subr.bf16.mxu0 %v5102_v50 }
 0x464   :  { %3646 = vmatpush1.bf16.msra.mxu0 %v5100_v25 }
 0x465   :  { %3647 = vmatprep.subr.bf16.mxu0 %v5105_v51 }
 0x468   :  { %3648 = vmatpush1.bf16.msra.mxu0 %v5103_v52  ;;  %v2273_v52 = vsub.s32 6, %v5478_v4 }
 0x469   :  { %3649 = vmatprep.subr.bf16.mxu0 %v5108_v27 }
 0x46a   :  { %v2274_v27 = vrot.slane %v5671_v6, %v2273_v52 }
 0x46c   :  { %3650 = vmatpush1.bf16.msra.mxu0 %v5106_v53 }
 0x46d   :  { %3651 = vmatprep.subr.bf16.mxu0 %v5111_v54 }
 0x470   :  { %3652 = vmatpush1.bf16.msra.mxu0 %v5109_v24 }
 0x471   :  { %3653 = vmatprep.subr.bf16.mxu0 %v5114_v55 }
 0x474   :  { %3654 = vmatpush1.bf16.msra.mxu0 %v5112_v56 }
 0x475   :  { %3655 = vmatprep.subr.bf16.mxu0 %v5117_v57 }
 0x478   :  { %3656 = vmatpush1.bf16.msra.mxu0 %v5115_v58 }
 0x479   :  { %3657 = vmatprep.subr.bf16.mxu0 %v5120_v59 }
 0x47c   :  { %3658 = vmatpush1.bf16.msra.mxu0 %v5118_v60 }
 0x47d   :  { %3659 = vmatprep.subr.bf16.mxu0 %v5123_v62 }
 0x480   :  { %3660 = vmatpush1.bf16.msra.mxu0 %v5121_v63 }
 0x481   :  { %3661 = vmatprep.subr.bf16.mxu0 %v5126_v0  ;;  %v2265_v0 = vsub.s32 4, %v5478_v4 }
 0x484   :  { %3662 = vmatpush1.bf16.msra.mxu0 %v5124_v1  ;;  %v2269_v1 = vsub.s32 5, %v5478_v4 }
 0x485   :  { %3663 = vmatprep.subr.bf16.mxu0 %v5129_v2 }
 0x488   :  { %3664 = vmatpush1.bf16.msra.mxu0 %v5127_v3 }
 0x489   :  { %3665 = vmatprep.subr.bf16.mxu0 %v5132_v9  ;;  %v2266_v9 = vrot.slane %v5671_v6, %v2265_v0 }
 0x48c   :  { %3666 = vmatpush1.bf16.msra.mxu0 %v5130_v10  ;;  %v2270_v10 = vrot.slane %v5671_v6, %v2269_v1 }
 0x48d   :  { %3667 = vmatprep.subr.bf16.mxu0 %v5135_v11 }
 0x490   :  { %3668 = vmatpush1.bf16.msra.mxu0 %v5133_v14 }
 0x491   :  { %3669 = vmatprep.subr.bf16.mxu0 %v5138_v16 }
 0x494   :  { %3670 = vmatpush1.bf16.msra.mxu0 %v5136_v17 }
 0x497   :  { %3672 = vmatmul.mubr.bf16.vlgmr.msra.gmra.mrb[8].mxu0 %v5656_v38  ;;  %v2262_v38 = vrot.slane %v5671_v6, %v5492_v8 }
 0x4d7   :  { %v1874_v18 = vpop.xlane.xlu0 %1873 }
 0x4d8   :  { %v1877_v19 = vsel %vm1876_vm2, %v1874_v18, 0.0 }
 0x4d9   :  { %1878 = vadd.xlane.f32.xlu1 %v1877_v19 }
 0x4ea   :  { %v3509_v13 = vpop.f32.mrb[4].mxu0 }
 0x4eb   :  { %v3591_v23 = vpop.f32.mrb[8].mxu1  ;;  %v4459_v33 = vadd.f32 %v3509_v13, %v2250_v12  ;;  %v3511_v28 = vpop.f32.mrb[5].mxu0 }
 0x4ec   :  { %v4461_v26 = vadd.f32 %v3591_v23, %v2258_v21  ;;  %v3593_v29 = vpop.f32.mrb[9].mxu1  ;;  %v4460_v30 = vadd.f32 %v3511_v28, %v2254_v22  ;;  %v3513_v32 = vpop.f32.mrb[6].mxu0 }
 0x4ed   :  { %v4462_v31 = vadd.f32 %v3593_v29, %v2262_v38  ;;  %v3595_v34 = vpop.f32.mrb[10].mxu1  ;;  %v4270_v5 = vmul.f32 -1.442695, %v4459_v33  ;;  %v3514_v36 = vpop.f32.mrb[7].mxu0 }
 0x4ee   :  { %v4272_v35 = vmul.f32 -1.442695, %v4461_v26  ;;  %v3596_v61 = vpop.f32.mrb[11].mxu1  ;;  %v4271_v37 = vmul.f32 -1.442695, %v4460_v30 }
 0x4ef   :  { %v4273_v39 = vmul.f32 -1.442695, %v4462_v31  ;;  %5141 = vpow2.f32 %v4270_v5 }
 0x4f0   :  { %5143 = vpow2.f32 %v4272_v35 }
 0x4f1   :  { %5145 = vpow2.f32 %v4271_v37 }
 0x4f2   :  { %5147 = vpow2.f32 %v4273_v39 }
 0x4f9   :  { %v5142_v7 = vpop.eup %5141 }
 0x4fa   :  { %v5144_v8 = vpop.eup %5143  ;;  %v3781_v40 = vadd.f32 1.0, %v5142_v7 }
 0x4fb   :  { %v5146_v41 = vpop.eup %5145  ;;  %v3783_v20 = vadd.f32 1.0, %v5144_v8 }
 0x4fc   :  { %v5148_v42 = vpop.eup %5147  ;;  %5149 = vrcp.f32 %v3781_v40  ;;  %v3782_v43 = vadd.f32 1.0, %v5146_v41 }
 0x4fd   :  { %5151 = vrcp.f32 %v3783_v20  ;;  %v3784_v15 = vadd.f32 1.0, %v5148_v42 }
 0x4fe   :  { %5153 = vrcp.f32 %v3782_v43 }
 0x4ff   :  { %5155 = vrcp.f32 %v3784_v15 }
 0x506   :  { %v5150_v44 = vpop.eup %5149 }
 0x507   :  { %v5152_v45 = vpop.eup %5151  ;;  %3802 = vst [vmem:[#allocation8] sm:$0xff] %v5150_v44 }
 0x508   :  { %v5154_v46 = vpop.eup %5153  ;;  %3804 = vst [vmem:[#allocation8 + $0x10] sm:$0xff] %v5152_v45 }
 0x509   :  { %v5156_v47 = vpop.eup %5155  ;;  %3803 = vst [vmem:[#allocation8 + $0x8] sm:$0xff] %v5154_v46 }
 0x50a   :  { %3805 = vst [vmem:[#allocation8 + $0x18] sm:$0xff] %v5156_v47 }
 0x50b   :  { %v4363_v48 = vpop.f32.mrb[12].mxu1 }
 0x50c   :  { %v4364_v49 = vpop.f32.mrb[13].mxu1 }
 0x50d   :  { %v4365_v50 = vadd.f32 %v4364_v49, %v4363_v48  ;;  %v4366_v25 = vpop.f32.mrb[14].mxu1 }
 0x50e   :  { %v4367_v51 = vpop.f32.mrb[15].mxu1 }
 0x50f   :  { %v3715_v24 = vadd.f32 %v4365_v50, %v2274_v27 }
 0x52b   :  { %v4385_v53 = vpop.f32.mrb[16].mxu1 }
 0x52c   :  { %v4386_v54 = vpop.f32.mrb[17].mxu1 }
 0x52d   :  { %v4387_v55 = vadd.f32 %v4386_v54, %v4385_v53  ;;  %v4388_v56 = vpop.f32.mrb[18].mxu1 }
 0x52e   :  { %v4389_v57 = vpop.f32.mrb[19].mxu1 }
 0x52f   :  { %v3755_v58 = vadd.f32 %v4387_v55, %v3715_v24 }
 0x531   :  { %v4276_v59 = vmul.f32 -1.442695, %v3755_v58 }
 0x533   :  { %5157 = vpow2.f32 %v4276_v59 }
 0x53d   :  { %v5158_v60 = vpop.eup %5157 }
 0x53e   :  { %v3787_v62 = vadd.f32 1.0, %v5158_v60 }
 0x540   :  { %5159 = vrcp.f32 %v3787_v62 }
 0x54a   :  { %v5160_v63 = vpop.eup %5159 }
 0x54b   :  { %3808 = vst [vmem:[#allocation8 + $0x30] sm:$0xff] %v5160_v63 }
 0x566   :  { %v1879_v2 = vpop.xlane.xlu1 %1878 }
 0x567   :  { %v1880_v3 = vrot.slane %v1879_v2, 4 }
 0x569   :  { %v1881_v11 = vadd.f32 %v1880_v3, %v1879_v2 }
 0x56a   :  { %v3673_v14 = vpop.f32.mrb[8].mxu0 }
 0x56b   :  { %v1882_v16 = vrot.slane %v1881_v11, 2  ;;  %v4463_v17 = vadd.f32 %v3673_v14, %v2266_v9  ;;  %v3675_v18 = vpop.f32.mrb[9].mxu0 }
 0x56c   :  { %v4464_v19 = vadd.f32 %v3675_v18, %v2270_v10  ;;  %v3677_v12 = vpop.f32.mrb[10].mxu0 }
 0x56d   :  { %v4274_v21 = vmul.f32 -1.442695, %v4463_v17  ;;  %v3678_v22 = vpop.f32.mrb[11].mxu0  ;;  %v1883_v38 = vadd.f32 %v1882_v16, %v1881_v11 }
 0x56e   :  { %v4275_v13 = vmul.f32 -1.442695, %v4464_v19 }
 0x56f   :  { %5161 = vpow2.f32 %v4274_v21  ;;  %v1884_v23 = vrot.slane %v1883_v38, 1 }
 0x570   :  { %5163 = vpow2.f32 %v4275_v13 }
 0x571   :  { %v1885_v4 = vadd.f32 %v1884_v23, %v1883_v38 }
 0x573   :  { %4501 = vpush %v1885_v4 }
 0x579   :  { %v5162_v33 = vpop.eup %5161 }
 0x57a   :  { %v5164_v26 = vpop.eup %5163  ;;  %v3785_v28 = vadd.f32 1.0, %v5162_v33 }
 0x57b   :  { %v3786_v6 = vadd.f32 1.0, %v5164_v26 }
 0x57c   :  { %5165 = vrcp.f32 %v3785_v28 }
 0x57d   :  { %5167 = vrcp.f32 %v3786_v6 }
 0x586   :  { %v5166_v29 = vpop.eup %5165 }
 0x587   :  { %v5168_v30 = vpop.eup %5167  ;;  %3806 = vst [vmem:[#allocation8 + $0x20] sm:$0xff] %v5166_v29 }
 0x588   :  { %3807 = vst [vmem:[#allocation8 + $0x28] sm:$0xff] %v5168_v30 }
 0x589   :  { %5224 = shalt.err (!%p5221_p6)
}
 0x58a   :  { %s5225_s21 = scalar_lea.hbm %s5721_s10, 896 }
 0x58b   :  { %p5226_p7 = scmp.ne.s32.totalorder %s5721_s10, %s5225_s21  ;;  %p5229_p8 = scmp.lt.u32.totalorder %s5225_s21, %s5721_s10 }
 0x58d   :  { %p5231_p9 = pnand %p5229_p8, %p5226_p7 }
 0x58f   :  { %5234 = shalt.err (!%p5231_p9)
}
 0x590   :  { %3818 = dma.vmem_to_hbm [thread:$0]  %s3816_s3, 896, %s5721_s10, [#allocation4]  }
 0x591   :  { %s5235_s28 = scalar_lea.hbm %s5722_s11, 16 }
 0x592   :  { %p5236_p10 = scmp.ne.s32.totalorder %s5722_s11, %s5235_s28  ;;  %p5239_p11 = scmp.lt.u32.totalorder %s5235_s28, %s5722_s11 }
 0x594   :  { %p5241_p12 = pnand %p5239_p11, %p5236_p10 }
 0x5a4   :  { %s4502_s25 = spop %4501 }
 0x5a5   :  { %1888 = sst [smem:[#allocation9]] %s4502_s25 }
 0x5a6   :  { %5244 = shalt.err (!%p5241_p12)
}
 0x5a7   :  { %s5264_s0 = smov [#allocation9]  }
 0x5a8   :  { %3826 = dma.smem_to_hbm %s5264_s0, 16, %s5722_s11, [#allocation5]  }
 0x5a9   :  { %5249 = dma.done.wait [#allocation4], 896  }
 0x5aa   :  { %5250 = vsyncadd [#allocation4], 4294966400 }
 0x5ab   :  { %5251 = dma.done.wait [#allocation5], 16  }
 0x5ac   :  { %5252 = vsyncadd [#allocation5], 4294967280 }
 0x5ad   :  { %3833 = sfence }
 0x5ae   :  { %3834 = vsyncpa [#allocation3], 1 }
 0x5af   :  { %3835 = vsyncpa [#allocation7], 1 }
 0x5b0   :  { %3836 = vsyncpa [#allocation4], 1 }
 0x5b1   :  { %3837 = vsyncpa [#allocation5], 1 }

</bundles_post_ra>
